<compile_context>
chip_gen: v6e
topology: v6e:2x2x1
jax: 0.10.0
libtpu: 0.0.40
codegen_flags: <defaults>
</compile_context>

<pallas_src>
import functools

import jax
import jax.numpy as jnp
from jax import lax
from jax.experimental import pallas as pl
from jax.experimental.pallas import tpu as pltpu


# ----------------------------------------------------------------------------- kernel

def _gate_math(gates, c, gw):
    """LSTM gate nonlinearity on a (1, 4*gw) gate row with slab order [i | f | o | g].

    Three sigmoids are applied to one contiguous (1, 3*gw) slice (single EUP slab),
    tanh to the trailing gw lanes; i/f/o are then peeled off with static lane slices.
    """
    sig = jax.nn.sigmoid(gates[:, : 3 * gw])          # i, f, o in one EUP call
    g = jnp.tanh(gates[:, 3 * gw: 4 * gw])
    i = sig[:, 0 * gw:1 * gw]
    f = sig[:, 1 * gw:2 * gw]
    o = sig[:, 2 * gw:3 * gw]
    c_new = f * c + i * g
    h_new = o * jnp.tanh(c_new)
    return h_new, c_new


def encoder_kernel(x_ref, wih1_ref, whh1_ref, b1_ref, wih2_ref, whh2_ref, b2_ref,
                   out_ref, g1_ref, *, seq_len, hdim, edim):
    # --- hoisted layer-1 input projection: n_features == 1 -> pure VPU broadcast-multiply.
    g1_ref[...] = x_ref[...] * wih1_ref[...] + b1_ref[...]        # (seq, 4*hdim)

    whh1 = whh1_ref[...]                                          # (hdim, 4*hdim)  = (64, 256)
    wih2 = wih2_ref[...]                                          # (hdim, 4*edim)  = (64, 128)
    whh2 = whh2_ref[...]                                          # (edim, 4*edim)  = (32, 128)
    b2 = b2_ref[...]                                              # (1, 4*edim)

    # --- interleaved recurrence: layer-1 cell t, then layer-2 cell t.  Fully unrolled so the
    #     scheduler overlaps layer-2 of step t with layer-1 of step t+1 (independent chains).
    def body(t, carry):
        h1, c1, h2, c2 = carry
        gates1 = g1_ref[pl.ds(t, 1), :] + jnp.dot(
            h1, whh1, preferred_element_type=jnp.float32)
        h1n, c1n = _gate_math(gates1, c1, hdim)

        gates2 = (b2
                  + jnp.dot(h1n, wih2, preferred_element_type=jnp.float32)
                  + jnp.dot(h2, whh2, preferred_element_type=jnp.float32))
        h2n, c2n = _gate_math(gates2, c2, edim)
        return (h1n, c1n, h2n, c2n)

    z1 = jnp.zeros((1, hdim), jnp.float32)
    z2 = jnp.zeros((1, edim), jnp.float32)
    _, _, h2_final, _ = lax.fori_loop(0, seq_len, body, (z1, z1, z2, z2), unroll=True)

    out_ref[...] = h2_final                                       # (1, edim)


# ----------------------------------------------------------------------------- weight prep

def _reorder_gate_cols(w_t, h):
    """(in, 4h) columns in PyTorch gate order [i, f, g, o] -> kernel order [i, f, o, g]."""
    return jnp.concatenate(
        [w_t[:, 0 * h:1 * h], w_t[:, 1 * h:2 * h], w_t[:, 3 * h:4 * h], w_t[:, 2 * h:3 * h]],
        axis=1)


def prepare_encoder_params(params, *, n_features, embedding_dim):
    """One-time prep: transpose PyTorch (4H, in) weights, fuse biases, reorder gate slabs."""
    H = 2 * embedding_dim
    E = embedding_dim
    f32 = lambda a: jnp.asarray(a, jnp.float32)

    wih1 = _reorder_gate_cols(f32(params["w_ih1"]).T, H)                        # (nfeat, 4H)
    whh1 = _reorder_gate_cols(f32(params["w_hh1"]).T, H)                        # (H, 4H)
    b1 = _reorder_gate_cols(f32(params["b_ih1"] + params["b_hh1"])[None, :], H)  # (1, 4H)
    wih2 = _reorder_gate_cols(f32(params["w_ih2"]).T, E)                        # (H, 4E)
    whh2 = _reorder_gate_cols(f32(params["w_hh2"]).T, E)                        # (E, 4E)
    b2 = _reorder_gate_cols(f32(params["b_ih2"] + params["b_hh2"])[None, :], E)  # (1, 4E)

    assert wih1.shape == (n_features, 4 * H)
    return {"wih1": wih1, "whh1": whh1, "b1": b1, "wih2": wih2, "whh2": whh2, "b2": b2}


# ----------------------------------------------------------------------------- forward

@functools.partial(jax.jit, static_argnames=("seq_len", "n_features", "embedding_dim"))
def encoder_forward(x, prepped, *, seq_len, n_features, embedding_dim):
    assert n_features == 1, "Encoder's final reshape requires n_features == 1"
    H = 2 * embedding_dim
    E = embedding_dim

    x2 = jnp.asarray(x, jnp.float32).reshape(seq_len, n_features)

    kernel = functools.partial(encoder_kernel, seq_len=seq_len, hdim=H, edim=E)

    def vmem_spec():
        return pl.BlockSpec(memory_space=pltpu.MemorySpace.VMEM)

    h2 = pl.pallas_call(
        kernel,
        out_shape=jax.ShapeDtypeStruct((1, E), jnp.float32),
        in_specs=[vmem_spec() for _ in range(7)],
        out_specs=vmem_spec(),
        scratch_shapes=[
            pltpu.VMEM((seq_len, 4 * H), jnp.float32),    # hoisted layer-1 gate pre-projection
        ],
    )(x2, prepped["wih1"], prepped["whh1"], prepped["b1"],
      prepped["wih2"], prepped["whh2"], prepped["b2"])

    return h2.reshape(n_features, embedding_dim)


# ----------------------------------------------------------------------------- init / reference

def init_encoder_params(key, seq_len, n_features, embedding_dim):
    """Deterministic PyTorch-style LSTM init: U(-1/sqrt(H), 1/sqrt(H))."""
    hidden_dim = 2 * embedding_dim
    keys = jax.random.split(key, 8)

    def u(k, shape, H):
        bound = 1.0 / jnp.sqrt(jnp.float32(H))
        return jax.random.uniform(k, shape, jnp.float32, -bound, bound)

    return {
        "w_ih1": u(keys[0], (4 * hidden_dim, n_features), hidden_dim),
        "w_hh1": u(keys[1], (4 * hidden_dim, hidden_dim), hidden_dim),
        "b_ih1": u(keys[2], (4 * hidden_dim,), hidden_dim),
        "b_hh1": u(keys[3], (4 * hidden_dim,), hidden_dim),
        "w_ih2": u(keys[4], (4 * embedding_dim, hidden_dim), embedding_dim),
        "w_hh2": u(keys[5], (4 * embedding_dim, embedding_dim), embedding_dim),
        "b_ih2": u(keys[6], (4 * embedding_dim,), embedding_dim),
        "b_hh2": u(keys[7], (4 * embedding_dim,), embedding_dim),
    }


def encoder_reference(x, params, *, seq_len, n_features, embedding_dim):
    """Pure-JAX reference of the PyTorch forward (gate order [i, f, g, o])."""
    hidden_dim = 2 * embedding_dim
    xs = jnp.asarray(x, jnp.float32).reshape(seq_len, n_features)

    def cell(w_ih, w_hh, b_ih, b_hh, H):
        def step(carry, x_t):
            h, c = carry
            g = x_t @ w_ih.T + h @ w_hh.T + b_ih + b_hh
            i = jax.nn.sigmoid(g[0 * H:1 * H])
            f = jax.nn.sigmoid(g[1 * H:2 * H])
            gg = jnp.tanh(g[2 * H:3 * H])
            o = jax.nn.sigmoid(g[3 * H:4 * H])
            c = f * c + i * gg
            h = o * jnp.tanh(c)
            return (h, c), h
        return step

    step1 = cell(params["w_ih1"], params["w_hh1"], params["b_ih1"], params["b_hh1"], hidden_dim)
    (_, _), h1_seq = lax.scan(step1, (jnp.zeros(hidden_dim), jnp.zeros(hidden_dim)), xs)
    step2 = cell(params["w_ih2"], params["w_hh2"], params["b_ih2"], params["b_hh2"], embedding_dim)
    (h2, _), _ = lax.scan(step2, (jnp.zeros(embedding_dim), jnp.zeros(embedding_dim)), h1_seq)
    return h2.reshape(n_features, embedding_dim)


if __name__ == "__main__":
    seq_len, n_features, embedding_dim = 8, 1, 32   # n_features must be 1 (module reshape)

    key = jax.random.PRNGKey(0)
    k_param, k_x = jax.random.split(key)
    params = init_encoder_params(k_param, seq_len, n_features, embedding_dim)
    x = jax.random.normal(k_x, (seq_len, n_features), jnp.float32)

    # One-time weight prep (hoisted out of the per-call path).
    prepped = prepare_encoder_params(params, n_features=n_features,
                                     embedding_dim=embedding_dim)
    prepped = jax.tree_util.tree_map(jax.block_until_ready, prepped)

    out = encoder_forward(x, prepped, seq_len=seq_len, n_features=n_features,
                          embedding_dim=embedding_dim)
    out = jax.block_until_ready(out)

    ref = encoder_reference(x, params, seq_len=seq_len, n_features=n_features,
                            embedding_dim=embedding_dim)
    assert out.shape == (n_features, embedding_dim)
    assert jnp.allclose(out, ref, atol=3e-5, rtol=1e-4), "mismatch vs pure-JAX reference"

    print("KERNEL_OK")
</pallas_src>

<mosaic_0001>
module attributes {stable_mosaic.version = 11 : i64} {
  func.func @encoder_kernel(%arg0: memref<8x1xf32, #tpu.memory_space<vmem>>, %arg1: memref<1x256xf32, #tpu.memory_space<vmem>>, %arg2: memref<64x256xf32, #tpu.memory_space<vmem>>, %arg3: memref<1x256xf32, #tpu.memory_space<vmem>>, %arg4: memref<64x128xf32, #tpu.memory_space<vmem>>, %arg5: memref<32x128xf32, #tpu.memory_space<vmem>>, %arg6: memref<1x128xf32, #tpu.memory_space<vmem>>, %arg7: memref<1x32xf32, #tpu.memory_space<vmem>>, %arg8: memref<8x256xf32, #tpu.memory_space<vmem>>) attributes {dimension_semantics = [], scalar_prefetch = 0 : i64, scratch_operands = 1 : i64, tpu.core_type = #tpu.core_type<tc>} {
    %c0 = arith.constant 0 : index
    %c0_0 = arith.constant 0 : index
    %0 = vector.load %arg0[%c0, %c0_0] : memref<8x1xf32, #tpu.memory_space<vmem>>, vector<8x1xf32>
    %c0_1 = arith.constant 0 : index
    %c0_2 = arith.constant 0 : index
    %1 = vector.load %arg1[%c0_1, %c0_2] : memref<1x256xf32, #tpu.memory_space<vmem>>, vector<1x256xf32>
    %2 = vector.broadcast %0 : vector<8x1xf32> to vector<8x256xf32>
    %3 = vector.broadcast %1 : vector<1x256xf32> to vector<8x256xf32>
    %4 = arith.mulf %2, %3 : vector<8x256xf32>
    %c0_3 = arith.constant 0 : index
    %c0_4 = arith.constant 0 : index
    %5 = vector.load %arg3[%c0_3, %c0_4] : memref<1x256xf32, #tpu.memory_space<vmem>>, vector<1x256xf32>
    %6 = vector.broadcast %5 : vector<1x256xf32> to vector<8x256xf32>
    %7 = arith.addf %4, %6 : vector<8x256xf32>
    %c0_5 = arith.constant 0 : index
    %c0_6 = arith.constant 0 : index
    %8 = vector.load %arg8[%c0_5, %c0_6] : memref<8x256xf32, #tpu.memory_space<vmem>>, vector<8x256xf32>
    tpu.vector_store %arg8[%c0_5, %c0_6], %7 {strides = array<i32>} : memref<8x256xf32, #tpu.memory_space<vmem>>, vector<8x256xf32>,
    %c0_7 = arith.constant 0 : index
    %c0_8 = arith.constant 0 : index
    %9 = vector.load %arg2[%c0_7, %c0_8] : memref<64x256xf32, #tpu.memory_space<vmem>>, vector<64x256xf32>
    %c0_9 = arith.constant 0 : index
    %c0_10 = arith.constant 0 : index
    %10 = vector.load %arg4[%c0_9, %c0_10] : memref<64x128xf32, #tpu.memory_space<vmem>>, vector<64x128xf32>
    %c0_11 = arith.constant 0 : index
    %c0_12 = arith.constant 0 : index
    %11 = vector.load %arg5[%c0_11, %c0_12] : memref<32x128xf32, #tpu.memory_space<vmem>>, vector<32x128xf32>
    %c0_13 = arith.constant 0 : index
    %c0_14 = arith.constant 0 : index
    %12 = vector.load %arg6[%c0_13, %c0_14] : memref<1x128xf32, #tpu.memory_space<vmem>>, vector<1x128xf32>
    %cst = arith.constant 0.000000e+00 : f32
    %13 = vector.broadcast %cst : f32 to vector<1x64xf32>
    %cst_15 = arith.constant 0.000000e+00 : f32
    %14 = vector.broadcast %cst_15 : f32 to vector<1x32xf32>
    %c0_i32 = arith.constant 0 : i32
    %15 = arith.index_cast %c0_i32 : i32 to index
    %c0_16 = arith.constant 0 : index
    %16 = vector.load %arg8[%15, %c0_16] : memref<8x256xf32, #tpu.memory_space<vmem>>, vector<1x256xf32>
    %cst_17 = arith.constant dense<0.000000e+00> : vector<1x256xf32>
    %17 = tpu.matmul %13, %9, %cst_17 {dimension_numbers = #tpu.dot_dimension_numbers<[1], [0], [0], [1], [0, 0, 1, 1], [], []>} : vector<1x64xf32>, vector<64x256xf32>, vector<1x256xf32> -> vector<1x256xf32>
    %18 = arith.addf %16, %17 : vector<1x256xf32>
    %19 = vector.extract_strided_slice %18 {offsets = [0, 0], sizes = [1, 192], strides = [1, 1]} : vector<1x256xf32> to vector<1x192xf32>
    %20 = arith.negf %19 : vector<1x192xf32>
    %21 = math.exp %20 : vector<1x192xf32>
    %cst_18 = arith.constant 1.000000e+00 : f32
    %22 = vector.broadcast %cst_18 : f32 to vector<1x192xf32>
    %23 = arith.addf %22, %21 : vector<1x192xf32>
    %24 = arith.divf %22, %23 : vector<1x192xf32>
    %25 = vector.extract_strided_slice %18 {offsets = [0, 192], sizes = [1, 64], strides = [1, 1]} : vector<1x256xf32> to vector<1x64xf32>
    %26 = math.tanh %25 : vector<1x64xf32>
    %27 = vector.extract_strided_slice %24 {offsets = [0, 0], sizes = [1, 64], strides = [1, 1]} : vector<1x192xf32> to vector<1x64xf32>
    %28 = vector.extract_strided_slice %24 {offsets = [0, 64], sizes = [1, 64], strides = [1, 1]} : vector<1x192xf32> to vector<1x64xf32>
    %29 = vector.extract_strided_slice %24 {offsets = [0, 128], sizes = [1, 64], strides = [1, 1]} : vector<1x192xf32> to vector<1x64xf32>
    %30 = arith.mulf %28, %13 : vector<1x64xf32>
    %31 = arith.mulf %27, %26 : vector<1x64xf32>
    %32 = arith.addf %30, %31 : vector<1x64xf32>
    %33 = math.tanh %32 : vector<1x64xf32>
    %34 = arith.mulf %29, %33 : vector<1x64xf32>
    %cst_19 = arith.constant dense<0.000000e+00> : vector<1x128xf32>
    %35 = tpu.matmul %34, %10, %cst_19 {dimension_numbers = #tpu.dot_dimension_numbers<[1], [0], [0], [1], [0, 0, 1, 1], [], []>} : vector<1x64xf32>, vector<64x128xf32>, vector<1x128xf32> -> vector<1x128xf32>
    %36 = arith.addf %12, %35 : vector<1x128xf32>
    %cst_20 = arith.constant dense<0.000000e+00> : vector<1x128xf32>
    %37 = tpu.matmul %14, %11, %cst_20 {dimension_numbers = #tpu.dot_dimension_numbers<[1], [0], [0], [1], [0, 0, 1, 1], [], []>} : vector<1x32xf32>, vector<32x128xf32>, vector<1x128xf32> -> vector<1x128xf32>
    %38 = arith.addf %36, %37 : vector<1x128xf32>
    %39 = vector.extract_strided_slice %38 {offsets = [0, 0], sizes = [1, 96], strides = [1, 1]} : vector<1x128xf32> to vector<1x96xf32>
    %40 = arith.negf %39 : vector<1x96xf32>
    %41 = math.exp %40 : vector<1x96xf32>
    %cst_21 = arith.constant 1.000000e+00 : f32
    %42 = vector.broadcast %cst_21 : f32 to vector<1x96xf32>
    %43 = arith.addf %42, %41 : vector<1x96xf32>
    %44 = arith.divf %42, %43 : vector<1x96xf32>
    %45 = vector.extract_strided_slice %38 {offsets = [0, 96], sizes = [1, 32], strides = [1, 1]} : vector<1x128xf32> to vector<1x32xf32>
    %46 = math.tanh %45 : vector<1x32xf32>
    %47 = vector.extract_strided_slice %44 {offsets = [0, 0], sizes = [1, 32], strides = [1, 1]} : vector<1x96xf32> to vector<1x32xf32>
    %48 = vector.extract_strided_slice %44 {offsets = [0, 32], sizes = [1, 32], strides = [1, 1]} : vector<1x96xf32> to vector<1x32xf32>
    %49 = vector.extract_strided_slice %44 {offsets = [0, 64], sizes = [1, 32], strides = [1, 1]} : vector<1x96xf32> to vector<1x32xf32>
    %50 = arith.mulf %48, %14 : vector<1x32xf32>
    %51 = arith.mulf %47, %46 : vector<1x32xf32>
    %52 = arith.addf %50, %51 : vector<1x32xf32>
    %53 = math.tanh %52 : vector<1x32xf32>
    %54 = arith.mulf %49, %53 : vector<1x32xf32>
    %c1_i32 = arith.constant 1 : i32
    %55 = arith.index_cast %c1_i32 : i32 to index
    %c0_22 = arith.constant 0 : index
    %56 = vector.load %arg8[%55, %c0_22] : memref<8x256xf32, #tpu.memory_space<vmem>>, vector<1x256xf32>
    %cst_23 = arith.constant dense<0.000000e+00> : vector<1x256xf32>
    %57 = tpu.matmul %34, %9, %cst_23 {dimension_numbers = #tpu.dot_dimension_numbers<[1], [0], [0], [1], [0, 0, 1, 1], [], []>} : vector<1x64xf32>, vector<64x256xf32>, vector<1x256xf32> -> vector<1x256xf32>
    %58 = arith.addf %56, %57 : vector<1x256xf32>
    %59 = vector.extract_strided_slice %58 {offsets = [0, 0], sizes = [1, 192], strides = [1, 1]} : vector<1x256xf32> to vector<1x192xf32>
    %60 = arith.negf %59 : vector<1x192xf32>
    %61 = math.exp %60 : vector<1x192xf32>
    %cst_24 = arith.constant 1.000000e+00 : f32
    %62 = vector.broadcast %cst_24 : f32 to vector<1x192xf32>
    %63 = arith.addf %62, %61 : vector<1x192xf32>
    %64 = arith.divf %62, %63 : vector<1x192xf32>
    %65 = vector.extract_strided_slice %58 {offsets = [0, 192], sizes = [1, 64], strides = [1, 1]} : vector<1x256xf32> to vector<1x64xf32>
    %66 = math.tanh %65 : vector<1x64xf32>
    %67 = vector.extract_strided_slice %64 {offsets = [0, 0], sizes = [1, 64], strides = [1, 1]} : vector<1x192xf32> to vector<1x64xf32>
    %68 = vector.extract_strided_slice %64 {offsets = [0, 64], sizes = [1, 64], strides = [1, 1]} : vector<1x192xf32> to vector<1x64xf32>
    %69 = vector.extract_strided_slice %64 {offsets = [0, 128], sizes = [1, 64], strides = [1, 1]} : vector<1x192xf32> to vector<1x64xf32>
    %70 = arith.mulf %68, %32 : vector<1x64xf32>
    %71 = arith.mulf %67, %66 : vector<1x64xf32>
    %72 = arith.addf %70, %71 : vector<1x64xf32>
    %73 = math.tanh %72 : vector<1x64xf32>
    %74 = arith.mulf %69, %73 : vector<1x64xf32>
    %cst_25 = arith.constant dense<0.000000e+00> : vector<1x128xf32>
    %75 = tpu.matmul %74, %10, %cst_25 {dimension_numbers = #tpu.dot_dimension_numbers<[1], [0], [0], [1], [0, 0, 1, 1], [], []>} : vector<1x64xf32>, vector<64x128xf32>, vector<1x128xf32> -> vector<1x128xf32>
    %76 = arith.addf %12, %75 : vector<1x128xf32>
    %cst_26 = arith.constant dense<0.000000e+00> : vector<1x128xf32>
    %77 = tpu.matmul %54, %11, %cst_26 {dimension_numbers = #tpu.dot_dimension_numbers<[1], [0], [0], [1], [0, 0, 1, 1], [], []>} : vector<1x32xf32>, vector<32x128xf32>, vector<1x128xf32> -> vector<1x128xf32>
    %78 = arith.addf %76, %77 : vector<1x128xf32>
    %79 = vector.extract_strided_slice %78 {offsets = [0, 0], sizes = [1, 96], strides = [1, 1]} : vector<1x128xf32> to vector<1x96xf32>
    %80 = arith.negf %79 : vector<1x96xf32>
    %81 = math.exp %80 : vector<1x96xf32>
    %cst_27 = arith.constant 1.000000e+00 : f32
    %82 = vector.broadcast %cst_27 : f32 to vector<1x96xf32>
    %83 = arith.addf %82, %81 : vector<1x96xf32>
    %84 = arith.divf %82, %83 : vector<1x96xf32>
    %85 = vector.extract_strided_slice %78 {offsets = [0, 96], sizes = [1, 32], strides = [1, 1]} : vector<1x128xf32> to vector<1x32xf32>
    %86 = math.tanh %85 : vector<1x32xf32>
    %87 = vector.extract_strided_slice %84 {offsets = [0, 0], sizes = [1, 32], strides = [1, 1]} : vector<1x96xf32> to vector<1x32xf32>
    %88 = vector.extract_strided_slice %84 {offsets = [0, 32], sizes = [1, 32], strides = [1, 1]} : vector<1x96xf32> to vector<1x32xf32>
    %89 = vector.extract_strided_slice %84 {offsets = [0, 64], sizes = [1, 32], strides = [1, 1]} : vector<1x96xf32> to vector<1x32xf32>
    %90 = arith.mulf %88, %52 : vector<1x32xf32>
    %91 = arith.mulf %87, %86 : vector<1x32xf32>
    %92 = arith.addf %90, %91 : vector<1x32xf32>
    %93 = math.tanh %92 : vector<1x32xf32>
    %94 = arith.mulf %89, %93 : vector<1x32xf32>
    %c2_i32 = arith.constant 2 : i32
    %95 = arith.index_cast %c2_i32 : i32 to index
    %c0_28 = arith.constant 0 : index
    %96 = vector.load %arg8[%95, %c0_28] : memref<8x256xf32, #tpu.memory_space<vmem>>, vector<1x256xf32>
    %cst_29 = arith.constant dense<0.000000e+00> : vector<1x256xf32>
    %97 = tpu.matmul %74, %9, %cst_29 {dimension_numbers = #tpu.dot_dimension_numbers<[1], [0], [0], [1], [0, 0, 1, 1], [], []>} : vector<1x64xf32>, vector<64x256xf32>, vector<1x256xf32> -> vector<1x256xf32>
    %98 = arith.addf %96, %97 : vector<1x256xf32>
    %99 = vector.extract_strided_slice %98 {offsets = [0, 0], sizes = [1, 192], strides = [1, 1]} : vector<1x256xf32> to vector<1x192xf32>
    %100 = arith.negf %99 : vector<1x192xf32>
    %101 = math.exp %100 : vector<1x192xf32>
    %cst_30 = arith.constant 1.000000e+00 : f32
    %102 = vector.broadcast %cst_30 : f32 to vector<1x192xf32>
    %103 = arith.addf %102, %101 : vector<1x192xf32>
    %104 = arith.divf %102, %103 : vector<1x192xf32>
    %105 = vector.extract_strided_slice %98 {offsets = [0, 192], sizes = [1, 64], strides = [1, 1]} : vector<1x256xf32> to vector<1x64xf32>
    %106 = math.tanh %105 : vector<1x64xf32>
    %107 = vector.extract_strided_slice %104 {offsets = [0, 0], sizes = [1, 64], strides = [1, 1]} : vector<1x192xf32> to vector<1x64xf32>
    %108 = vector.extract_strided_slice %104 {offsets = [0, 64], sizes = [1, 64], strides = [1, 1]} : vector<1x192xf32> to vector<1x64xf32>
    %109 = vector.extract_strided_slice %104 {offsets = [0, 128], sizes = [1, 64], strides = [1, 1]} : vector<1x192xf32> to vector<1x64xf32>
    %110 = arith.mulf %108, %72 : vector<1x64xf32>
    %111 = arith.mulf %107, %106 : vector<1x64xf32>
    %112 = arith.addf %110, %111 : vector<1x64xf32>
    %113 = math.tanh %112 : vector<1x64xf32>
    %114 = arith.mulf %109, %113 : vector<1x64xf32>
    %cst_31 = arith.constant dense<0.000000e+00> : vector<1x128xf32>
    %115 = tpu.matmul %114, %10, %cst_31 {dimension_numbers = #tpu.dot_dimension_numbers<[1], [0], [0], [1], [0, 0, 1, 1], [], []>} : vector<1x64xf32>, vector<64x128xf32>, vector<1x128xf32> -> vector<1x128xf32>
    %116 = arith.addf %12, %115 : vector<1x128xf32>
    %cst_32 = arith.constant dense<0.000000e+00> : vector<1x128xf32>
    %117 = tpu.matmul %94, %11, %cst_32 {dimension_numbers = #tpu.dot_dimension_numbers<[1], [0], [0], [1], [0, 0, 1, 1], [], []>} : vector<1x32xf32>, vector<32x128xf32>, vector<1x128xf32> -> vector<1x128xf32>
    %118 = arith.addf %116, %117 : vector<1x128xf32>
    %119 = vector.extract_strided_slice %118 {offsets = [0, 0], sizes = [1, 96], strides = [1, 1]} : vector<1x128xf32> to vector<1x96xf32>
    %120 = arith.negf %119 : vector<1x96xf32>
    %121 = math.exp %120 : vector<1x96xf32>
    %cst_33 = arith.constant 1.000000e+00 : f32
    %122 = vector.broadcast %cst_33 : f32 to vector<1x96xf32>
    %123 = arith.addf %122, %121 : vector<1x96xf32>
    %124 = arith.divf %122, %123 : vector<1x96xf32>
    %125 = vector.extract_strided_slice %118 {offsets = [0, 96], sizes = [1, 32], strides = [1, 1]} : vector<1x128xf32> to vector<1x32xf32>
    %126 = math.tanh %125 : vector<1x32xf32>
    %127 = vector.extract_strided_slice %124 {offsets = [0, 0], sizes = [1, 32], strides = [1, 1]} : vector<1x96xf32> to vector<1x32xf32>
    %128 = vector.extract_strided_slice %124 {offsets = [0, 32], sizes = [1, 32], strides = [1, 1]} : vector<1x96xf32> to vector<1x32xf32>
    %129 = vector.extract_strided_slice %124 {offsets = [0, 64], sizes = [1, 32], strides = [1, 1]} : vector<1x96xf32> to vector<1x32xf32>
    %130 = arith.mulf %128, %92 : vector<1x32xf32>
    %131 = arith.mulf %127, %126 : vector<1x32xf32>
    %132 = arith.addf %130, %131 : vector<1x32xf32>
    %133 = math.tanh %132 : vector<1x32xf32>
    %134 = arith.mulf %129, %133 : vector<1x32xf32>
    %c3_i32 = arith.constant 3 : i32
    %135 = arith.index_cast %c3_i32 : i32 to index
    %c0_34 = arith.constant 0 : index
    %136 = vector.load %arg8[%135, %c0_34] : memref<8x256xf32, #tpu.memory_space<vmem>>, vector<1x256xf32>
    %cst_35 = arith.constant dense<0.000000e+00> : vector<1x256xf32>
    %137 = tpu.matmul %114, %9, %cst_35 {dimension_numbers = #tpu.dot_dimension_numbers<[1], [0], [0], [1], [0, 0, 1, 1], [], []>} : vector<1x64xf32>, vector<64x256xf32>, vector<1x256xf32> -> vector<1x256xf32>
    %138 = arith.addf %136, %137 : vector<1x256xf32>
    %139 = vector.extract_strided_slice %138 {offsets = [0, 0], sizes = [1, 192], strides = [1, 1]} : vector<1x256xf32> to vector<1x192xf32>
    %140 = arith.negf %139 : vector<1x192xf32>
    %141 = math.exp %140 : vector<1x192xf32>
    %cst_36 = arith.constant 1.000000e+00 : f32
    %142 = vector.broadcast %cst_36 : f32 to vector<1x192xf32>
    %143 = arith.addf %142, %141 : vector<1x192xf32>
    %144 = arith.divf %142, %143 : vector<1x192xf32>
    %145 = vector.extract_strided_slice %138 {offsets = [0, 192], sizes = [1, 64], strides = [1, 1]} : vector<1x256xf32> to vector<1x64xf32>
    %146 = math.tanh %145 : vector<1x64xf32>
    %147 = vector.extract_strided_slice %144 {offsets = [0, 0], sizes = [1, 64], strides = [1, 1]} : vector<1x192xf32> to vector<1x64xf32>
    %148 = vector.extract_strided_slice %144 {offsets = [0, 64], sizes = [1, 64], strides = [1, 1]} : vector<1x192xf32> to vector<1x64xf32>
    %149 = vector.extract_strided_slice %144 {offsets = [0, 128], sizes = [1, 64], strides = [1, 1]} : vector<1x192xf32> to vector<1x64xf32>
    %150 = arith.mulf %148, %112 : vector<1x64xf32>
    %151 = arith.mulf %147, %146 : vector<1x64xf32>
    %152 = arith.addf %150, %151 : vector<1x64xf32>
    %153 = math.tanh %152 : vector<1x64xf32>
    %154 = arith.mulf %149, %153 : vector<1x64xf32>
    %cst_37 = arith.constant dense<0.000000e+00> : vector<1x128xf32>
    %155 = tpu.matmul %154, %10, %cst_37 {dimension_numbers = #tpu.dot_dimension_numbers<[1], [0], [0], [1], [0, 0, 1, 1], [], []>} : vector<1x64xf32>, vector<64x128xf32>, vector<1x128xf32> -> vector<1x128xf32>
    %156 = arith.addf %12, %155 : vector<1x128xf32>
    %cst_38 = arith.constant dense<0.000000e+00> : vector<1x128xf32>
    %157 = tpu.matmul %134, %11, %cst_38 {dimension_numbers = #tpu.dot_dimension_numbers<[1], [0], [0], [1], [0, 0, 1, 1], [], []>} : vector<1x32xf32>, vector<32x128xf32>, vector<1x128xf32> -> vector<1x128xf32>
    %158 = arith.addf %156, %157 : vector<1x128xf32>
    %159 = vector.extract_strided_slice %158 {offsets = [0, 0], sizes = [1, 96], strides = [1, 1]} : vector<1x128xf32> to vector<1x96xf32>
    %160 = arith.negf %159 : vector<1x96xf32>
    %161 = math.exp %160 : vector<1x96xf32>
    %cst_39 = arith.constant 1.000000e+00 : f32
    %162 = vector.broadcast %cst_39 : f32 to vector<1x96xf32>
    %163 = arith.addf %162, %161 : vector<1x96xf32>
    %164 = arith.divf %162, %163 : vector<1x96xf32>
    %165 = vector.extract_strided_slice %158 {offsets = [0, 96], sizes = [1, 32], strides = [1, 1]} : vector<1x128xf32> to vector<1x32xf32>
    %166 = math.tanh %165 : vector<1x32xf32>
    %167 = vector.extract_strided_slice %164 {offsets = [0, 0], sizes = [1, 32], strides = [1, 1]} : vector<1x96xf32> to vector<1x32xf32>
    %168 = vector.extract_strided_slice %164 {offsets = [0, 32], sizes = [1, 32], strides = [1, 1]} : vector<1x96xf32> to vector<1x32xf32>
    %169 = vector.extract_strided_slice %164 {offsets = [0, 64], sizes = [1, 32], strides = [1, 1]} : vector<1x96xf32> to vector<1x32xf32>
    %170 = arith.mulf %168, %132 : vector<1x32xf32>
    %171 = arith.mulf %167, %166 : vector<1x32xf32>
    %172 = arith.addf %170, %171 : vector<1x32xf32>
    %173 = math.tanh %172 : vector<1x32xf32>
    %174 = arith.mulf %169, %173 : vector<1x32xf32>
    %c4_i32 = arith.constant 4 : i32
    %175 = arith.index_cast %c4_i32 : i32 to index
    %c0_40 = arith.constant 0 : index
    %176 = vector.load %arg8[%175, %c0_40] : memref<8x256xf32, #tpu.memory_space<vmem>>, vector<1x256xf32>
    %cst_41 = arith.constant dense<0.000000e+00> : vector<1x256xf32>
    %177 = tpu.matmul %154, %9, %cst_41 {dimension_numbers = #tpu.dot_dimension_numbers<[1], [0], [0], [1], [0, 0, 1, 1], [], []>} : vector<1x64xf32>, vector<64x256xf32>, vector<1x256xf32> -> vector<1x256xf32>
    %178 = arith.addf %176, %177 : vector<1x256xf32>
    %179 = vector.extract_strided_slice %178 {offsets = [0, 0], sizes = [1, 192], strides = [1, 1]} : vector<1x256xf32> to vector<1x192xf32>
    %180 = arith.negf %179 : vector<1x192xf32>
    %181 = math.exp %180 : vector<1x192xf32>
    %cst_42 = arith.constant 1.000000e+00 : f32
    %182 = vector.broadcast %cst_42 : f32 to vector<1x192xf32>
    %183 = arith.addf %182, %181 : vector<1x192xf32>
    %184 = arith.divf %182, %183 : vector<1x192xf32>
    %185 = vector.extract_strided_slice %178 {offsets = [0, 192], sizes = [1, 64], strides = [1, 1]} : vector<1x256xf32> to vector<1x64xf32>
    %186 = math.tanh %185 : vector<1x64xf32>
    %187 = vector.extract_strided_slice %184 {offsets = [0, 0], sizes = [1, 64], strides = [1, 1]} : vector<1x192xf32> to vector<1x64xf32>
    %188 = vector.extract_strided_slice %184 {offsets = [0, 64], sizes = [1, 64], strides = [1, 1]} : vector<1x192xf32> to vector<1x64xf32>
    %189 = vector.extract_strided_slice %184 {offsets = [0, 128], sizes = [1, 64], strides = [1, 1]} : vector<1x192xf32> to vector<1x64xf32>
    %190 = arith.mulf %188, %152 : vector<1x64xf32>
    %191 = arith.mulf %187, %186 : vector<1x64xf32>
    %192 = arith.addf %190, %191 : vector<1x64xf32>
    %193 = math.tanh %192 : vector<1x64xf32>
    %194 = arith.mulf %189, %193 : vector<1x64xf32>
    %cst_43 = arith.constant dense<0.000000e+00> : vector<1x128xf32>
    %195 = tpu.matmul %194, %10, %cst_43 {dimension_numbers = #tpu.dot_dimension_numbers<[1], [0], [0], [1], [0, 0, 1, 1], [], []>} : vector<1x64xf32>, vector<64x128xf32>, vector<1x128xf32> -> vector<1x128xf32>
    %196 = arith.addf %12, %195 : vector<1x128xf32>
    %cst_44 = arith.constant dense<0.000000e+00> : vector<1x128xf32>
    %197 = tpu.matmul %174, %11, %cst_44 {dimension_numbers = #tpu.dot_dimension_numbers<[1], [0], [0], [1], [0, 0, 1, 1], [], []>} : vector<1x32xf32>, vector<32x128xf32>, vector<1x128xf32> -> vector<1x128xf32>
    %198 = arith.addf %196, %197 : vector<1x128xf32>
    %199 = vector.extract_strided_slice %198 {offsets = [0, 0], sizes = [1, 96], strides = [1, 1]} : vector<1x128xf32> to vector<1x96xf32>
    %200 = arith.negf %199 : vector<1x96xf32>
    %201 = math.exp %200 : vector<1x96xf32>
    %cst_45 = arith.constant 1.000000e+00 : f32
    %202 = vector.broadcast %cst_45 : f32 to vector<1x96xf32>
    %203 = arith.addf %202, %201 : vector<1x96xf32>
    %204 = arith.divf %202, %203 : vector<1x96xf32>
    %205 = vector.extract_strided_slice %198 {offsets = [0, 96], sizes = [1, 32], strides = [1, 1]} : vector<1x128xf32> to vector<1x32xf32>
    %206 = math.tanh %205 : vector<1x32xf32>
    %207 = vector.extract_strided_slice %204 {offsets = [0, 0], sizes = [1, 32], strides = [1, 1]} : vector<1x96xf32> to vector<1x32xf32>
    %208 = vector.extract_strided_slice %204 {offsets = [0, 32], sizes = [1, 32], strides = [1, 1]} : vector<1x96xf32> to vector<1x32xf32>
    %209 = vector.extract_strided_slice %204 {offsets = [0, 64], sizes = [1, 32], strides = [1, 1]} : vector<1x96xf32> to vector<1x32xf32>
    %210 = arith.mulf %208, %172 : vector<1x32xf32>
    %211 = arith.mulf %207, %206 : vector<1x32xf32>
    %212 = arith.addf %210, %211 : vector<1x32xf32>
    %213 = math.tanh %212 : vector<1x32xf32>
    %214 = arith.mulf %209, %213 : vector<1x32xf32>
    %c5_i32 = arith.constant 5 : i32
    %215 = arith.index_cast %c5_i32 : i32 to index
    %c0_46 = arith.constant 0 : index
    %216 = vector.load %arg8[%215, %c0_46] : memref<8x256xf32, #tpu.memory_space<vmem>>, vector<1x256xf32>
    %cst_47 = arith.constant dense<0.000000e+00> : vector<1x256xf32>
    %217 = tpu.matmul %194, %9, %cst_47 {dimension_numbers = #tpu.dot_dimension_numbers<[1], [0], [0], [1], [0, 0, 1, 1], [], []>} : vector<1x64xf32>, vector<64x256xf32>, vector<1x256xf32> -> vector<1x256xf32>
    %218 = arith.addf %216, %217 : vector<1x256xf32>
    %219 = vector.extract_strided_slice %218 {offsets = [0, 0], sizes = [1, 192], strides = [1, 1]} : vector<1x256xf32> to vector<1x192xf32>
    %220 = arith.negf %219 : vector<1x192xf32>
    %221 = math.exp %220 : vector<1x192xf32>
    %cst_48 = arith.constant 1.000000e+00 : f32
    %222 = vector.broadcast %cst_48 : f32 to vector<1x192xf32>
    %223 = arith.addf %222, %221 : vector<1x192xf32>
    %224 = arith.divf %222, %223 : vector<1x192xf32>
    %225 = vector.extract_strided_slice %218 {offsets = [0, 192], sizes = [1, 64], strides = [1, 1]} : vector<1x256xf32> to vector<1x64xf32>
    %226 = math.tanh %225 : vector<1x64xf32>
    %227 = vector.extract_strided_slice %224 {offsets = [0, 0], sizes = [1, 64], strides = [1, 1]} : vector<1x192xf32> to vector<1x64xf32>
    %228 = vector.extract_strided_slice %224 {offsets = [0, 64], sizes = [1, 64], strides = [1, 1]} : vector<1x192xf32> to vector<1x64xf32>
    %229 = vector.extract_strided_slice %224 {offsets = [0, 128], sizes = [1, 64], strides = [1, 1]} : vector<1x192xf32> to vector<1x64xf32>
    %230 = arith.mulf %228, %192 : vector<1x64xf32>
    %231 = arith.mulf %227, %226 : vector<1x64xf32>
    %232 = arith.addf %230, %231 : vector<1x64xf32>
    %233 = math.tanh %232 : vector<1x64xf32>
    %234 = arith.mulf %229, %233 : vector<1x64xf32>
    %cst_49 = arith.constant dense<0.000000e+00> : vector<1x128xf32>
    %235 = tpu.matmul %234, %10, %cst_49 {dimension_numbers = #tpu.dot_dimension_numbers<[1], [0], [0], [1], [0, 0, 1, 1], [], []>} : vector<1x64xf32>, vector<64x128xf32>, vector<1x128xf32> -> vector<1x128xf32>
    %236 = arith.addf %12, %235 : vector<1x128xf32>
    %cst_50 = arith.constant dense<0.000000e+00> : vector<1x128xf32>
    %237 = tpu.matmul %214, %11, %cst_50 {dimension_numbers = #tpu.dot_dimension_numbers<[1], [0], [0], [1], [0, 0, 1, 1], [], []>} : vector<1x32xf32>, vector<32x128xf32>, vector<1x128xf32> -> vector<1x128xf32>
    %238 = arith.addf %236, %237 : vector<1x128xf32>
    %239 = vector.extract_strided_slice %238 {offsets = [0, 0], sizes = [1, 96], strides = [1, 1]} : vector<1x128xf32> to vector<1x96xf32>
    %240 = arith.negf %239 : vector<1x96xf32>
    %241 = math.exp %240 : vector<1x96xf32>
    %cst_51 = arith.constant 1.000000e+00 : f32
    %242 = vector.broadcast %cst_51 : f32 to vector<1x96xf32>
    %243 = arith.addf %242, %241 : vector<1x96xf32>
    %244 = arith.divf %242, %243 : vector<1x96xf32>
    %245 = vector.extract_strided_slice %238 {offsets = [0, 96], sizes = [1, 32], strides = [1, 1]} : vector<1x128xf32> to vector<1x32xf32>
    %246 = math.tanh %245 : vector<1x32xf32>
    %247 = vector.extract_strided_slice %244 {offsets = [0, 0], sizes = [1, 32], strides = [1, 1]} : vector<1x96xf32> to vector<1x32xf32>
    %248 = vector.extract_strided_slice %244 {offsets = [0, 32], sizes = [1, 32], strides = [1, 1]} : vector<1x96xf32> to vector<1x32xf32>
    %249 = vector.extract_strided_slice %244 {offsets = [0, 64], sizes = [1, 32], strides = [1, 1]} : vector<1x96xf32> to vector<1x32xf32>
    %250 = arith.mulf %248, %212 : vector<1x32xf32>
    %251 = arith.mulf %247, %246 : vector<1x32xf32>
    %252 = arith.addf %250, %251 : vector<1x32xf32>
    %253 = math.tanh %252 : vector<1x32xf32>
    %254 = arith.mulf %249, %253 : vector<1x32xf32>
    %c6_i32 = arith.constant 6 : i32
    %255 = arith.index_cast %c6_i32 : i32 to index
    %c0_52 = arith.constant 0 : index
    %256 = vector.load %arg8[%255, %c0_52] : memref<8x256xf32, #tpu.memory_space<vmem>>, vector<1x256xf32>
    %cst_53 = arith.constant dense<0.000000e+00> : vector<1x256xf32>
    %257 = tpu.matmul %234, %9, %cst_53 {dimension_numbers = #tpu.dot_dimension_numbers<[1], [0], [0], [1], [0, 0, 1, 1], [], []>} : vector<1x64xf32>, vector<64x256xf32>, vector<1x256xf32> -> vector<1x256xf32>
    %258 = arith.addf %256, %257 : vector<1x256xf32>
    %259 = vector.extract_strided_slice %258 {offsets = [0, 0], sizes = [1, 192], strides = [1, 1]} : vector<1x256xf32> to vector<1x192xf32>
    %260 = arith.negf %259 : vector<1x192xf32>
    %261 = math.exp %260 : vector<1x192xf32>
    %cst_54 = arith.constant 1.000000e+00 : f32
    %262 = vector.broadcast %cst_54 : f32 to vector<1x192xf32>
    %263 = arith.addf %262, %261 : vector<1x192xf32>
    %264 = arith.divf %262, %263 : vector<1x192xf32>
    %265 = vector.extract_strided_slice %258 {offsets = [0, 192], sizes = [1, 64], strides = [1, 1]} : vector<1x256xf32> to vector<1x64xf32>
    %266 = math.tanh %265 : vector<1x64xf32>
    %267 = vector.extract_strided_slice %264 {offsets = [0, 0], sizes = [1, 64], strides = [1, 1]} : vector<1x192xf32> to vector<1x64xf32>
    %268 = vector.extract_strided_slice %264 {offsets = [0, 64], sizes = [1, 64], strides = [1, 1]} : vector<1x192xf32> to vector<1x64xf32>
    %269 = vector.extract_strided_slice %264 {offsets = [0, 128], sizes = [1, 64], strides = [1, 1]} : vector<1x192xf32> to vector<1x64xf32>
    %270 = arith.mulf %268, %232 : vector<1x64xf32>
    %271 = arith.mulf %267, %266 : vector<1x64xf32>
    %272 = arith.addf %270, %271 : vector<1x64xf32>
    %273 = math.tanh %272 : vector<1x64xf32>
    %274 = arith.mulf %269, %273 : vector<1x64xf32>
    %cst_55 = arith.constant dense<0.000000e+00> : vector<1x128xf32>
    %275 = tpu.matmul %274, %10, %cst_55 {dimension_numbers = #tpu.dot_dimension_numbers<[1], [0], [0], [1], [0, 0, 1, 1], [], []>} : vector<1x64xf32>, vector<64x128xf32>, vector<1x128xf32> -> vector<1x128xf32>
    %276 = arith.addf %12, %275 : vector<1x128xf32>
    %cst_56 = arith.constant dense<0.000000e+00> : vector<1x128xf32>
    %277 = tpu.matmul %254, %11, %cst_56 {dimension_numbers = #tpu.dot_dimension_numbers<[1], [0], [0], [1], [0, 0, 1, 1], [], []>} : vector<1x32xf32>, vector<32x128xf32>, vector<1x128xf32> -> vector<1x128xf32>
    %278 = arith.addf %276, %277 : vector<1x128xf32>
    %279 = vector.extract_strided_slice %278 {offsets = [0, 0], sizes = [1, 96], strides = [1, 1]} : vector<1x128xf32> to vector<1x96xf32>
    %280 = arith.negf %279 : vector<1x96xf32>
    %281 = math.exp %280 : vector<1x96xf32>
    %cst_57 = arith.constant 1.000000e+00 : f32
    %282 = vector.broadcast %cst_57 : f32 to vector<1x96xf32>
    %283 = arith.addf %282, %281 : vector<1x96xf32>
    %284 = arith.divf %282, %283 : vector<1x96xf32>
    %285 = vector.extract_strided_slice %278 {offsets = [0, 96], sizes = [1, 32], strides = [1, 1]} : vector<1x128xf32> to vector<1x32xf32>
    %286 = math.tanh %285 : vector<1x32xf32>
    %287 = vector.extract_strided_slice %284 {offsets = [0, 0], sizes = [1, 32], strides = [1, 1]} : vector<1x96xf32> to vector<1x32xf32>
    %288 = vector.extract_strided_slice %284 {offsets = [0, 32], sizes = [1, 32], strides = [1, 1]} : vector<1x96xf32> to vector<1x32xf32>
    %289 = vector.extract_strided_slice %284 {offsets = [0, 64], sizes = [1, 32], strides = [1, 1]} : vector<1x96xf32> to vector<1x32xf32>
    %290 = arith.mulf %288, %252 : vector<1x32xf32>
    %291 = arith.mulf %287, %286 : vector<1x32xf32>
    %292 = arith.addf %290, %291 : vector<1x32xf32>
    %293 = math.tanh %292 : vector<1x32xf32>
    %294 = arith.mulf %289, %293 : vector<1x32xf32>
    %c7_i32 = arith.constant 7 : i32
    %295 = arith.index_cast %c7_i32 : i32 to index
    %c0_58 = arith.constant 0 : index
    %296 = vector.load %arg8[%295, %c0_58] : memref<8x256xf32, #tpu.memory_space<vmem>>, vector<1x256xf32>
    %cst_59 = arith.constant dense<0.000000e+00> : vector<1x256xf32>
    %297 = tpu.matmul %274, %9, %cst_59 {dimension_numbers = #tpu.dot_dimension_numbers<[1], [0], [0], [1], [0, 0, 1, 1], [], []>} : vector<1x64xf32>, vector<64x256xf32>, vector<1x256xf32> -> vector<1x256xf32>
    %298 = arith.addf %296, %297 : vector<1x256xf32>
    %299 = vector.extract_strided_slice %298 {offsets = [0, 0], sizes = [1, 192], strides = [1, 1]} : vector<1x256xf32> to vector<1x192xf32>
    %300 = arith.negf %299 : vector<1x192xf32>
    %301 = math.exp %300 : vector<1x192xf32>
    %cst_60 = arith.constant 1.000000e+00 : f32
    %302 = vector.broadcast %cst_60 : f32 to vector<1x192xf32>
    %303 = arith.addf %302, %301 : vector<1x192xf32>
    %304 = arith.divf %302, %303 : vector<1x192xf32>
    %305 = vector.extract_strided_slice %298 {offsets = [0, 192], sizes = [1, 64], strides = [1, 1]} : vector<1x256xf32> to vector<1x64xf32>
    %306 = math.tanh %305 : vector<1x64xf32>
    %307 = vector.extract_strided_slice %304 {offsets = [0, 0], sizes = [1, 64], strides = [1, 1]} : vector<1x192xf32> to vector<1x64xf32>
    %308 = vector.extract_strided_slice %304 {offsets = [0, 64], sizes = [1, 64], strides = [1, 1]} : vector<1x192xf32> to vector<1x64xf32>
    %309 = vector.extract_strided_slice %304 {offsets = [0, 128], sizes = [1, 64], strides = [1, 1]} : vector<1x192xf32> to vector<1x64xf32>
    %310 = arith.mulf %308, %272 : vector<1x64xf32>
    %311 = arith.mulf %307, %306 : vector<1x64xf32>
    %312 = arith.addf %310, %311 : vector<1x64xf32>
    %313 = math.tanh %312 : vector<1x64xf32>
    %314 = arith.mulf %309, %313 : vector<1x64xf32>
    %cst_61 = arith.constant dense<0.000000e+00> : vector<1x128xf32>
    %315 = tpu.matmul %314, %10, %cst_61 {dimension_numbers = #tpu.dot_dimension_numbers<[1], [0], [0], [1], [0, 0, 1, 1], [], []>} : vector<1x64xf32>, vector<64x128xf32>, vector<1x128xf32> -> vector<1x128xf32>
    %316 = arith.addf %12, %315 : vector<1x128xf32>
    %cst_62 = arith.constant dense<0.000000e+00> : vector<1x128xf32>
    %317 = tpu.matmul %294, %11, %cst_62 {dimension_numbers = #tpu.dot_dimension_numbers<[1], [0], [0], [1], [0, 0, 1, 1], [], []>} : vector<1x32xf32>, vector<32x128xf32>, vector<1x128xf32> -> vector<1x128xf32>
    %318 = arith.addf %316, %317 : vector<1x128xf32>
    %319 = vector.extract_strided_slice %318 {offsets = [0, 0], sizes = [1, 96], strides = [1, 1]} : vector<1x128xf32> to vector<1x96xf32>
    %320 = arith.negf %319 : vector<1x96xf32>
    %321 = math.exp %320 : vector<1x96xf32>
    %cst_63 = arith.constant 1.000000e+00 : f32
    %322 = vector.broadcast %cst_63 : f32 to vector<1x96xf32>
    %323 = arith.addf %322, %321 : vector<1x96xf32>
    %324 = arith.divf %322, %323 : vector<1x96xf32>
    %325 = vector.extract_strided_slice %318 {offsets = [0, 96], sizes = [1, 32], strides = [1, 1]} : vector<1x128xf32> to vector<1x32xf32>
    %326 = math.tanh %325 : vector<1x32xf32>
    %327 = vector.extract_strided_slice %324 {offsets = [0, 0], sizes = [1, 32], strides = [1, 1]} : vector<1x96xf32> to vector<1x32xf32>
    %328 = vector.extract_strided_slice %324 {offsets = [0, 32], sizes = [1, 32], strides = [1, 1]} : vector<1x96xf32> to vector<1x32xf32>
    %329 = vector.extract_strided_slice %324 {offsets = [0, 64], sizes = [1, 32], strides = [1, 1]} : vector<1x96xf32> to vector<1x32xf32>
    %330 = arith.mulf %328, %292 : vector<1x32xf32>
    %331 = arith.mulf %327, %326 : vector<1x32xf32>
    %332 = arith.addf %330, %331 : vector<1x32xf32>
    %333 = math.tanh %332 : vector<1x32xf32>
    %334 = arith.mulf %329, %333 : vector<1x32xf32>
    %c8_i32 = arith.constant 8 : i32
    %c0_64 = arith.constant 0 : index
    %c0_65 = arith.constant 0 : index
    %335 = vector.load %arg7[%c0_64, %c0_65] : memref<1x32xf32, #tpu.memory_space<vmem>>, vector<1x32xf32>
    tpu.vector_store %arg7[%c0_64, %c0_65], %334 {strides = array<i32>} : memref<1x32xf32, #tpu.memory_space<vmem>>, vector<1x32xf32>,
    return
  }
}

</mosaic_0001>

<bundles_post_ra>
// kernel: encoder_forward.1
= control target key start
LH: loop header
LB: loop body
LE: loop exit
PB: predicated region body
PF: predicated region fallthrough
CT: control target
= control target key end

     0   :  { %12 = vsyncpa [#allocation4], 0  ;;  %s3920_s0 = inlined_call_operand.vmem [shape: f32[8,1], index: 0, kind: input, shape index: {}]   ;;  %s3921_s1 = inlined_call_operand.vmem [shape: f32[1,256], index: 1, kind: input, shape index: {}]   ;;  %s3922_s2 = inlined_call_operand.hbm [shape: f32[64,256], index: 2, kind: input, shape index: {}]   ;;  %s3923_s3 = inlined_call_operand.vmem [shape: f32[1,256], index: 3, kind: input, shape index: {}]   ;;  %s3924_s4 = inlined_call_operand.hbm [shape: f32[64,128], index: 4, kind: input, shape index: {}]   ;;  %s3925_s5 = inlined_call_operand.hbm [shape: f32[32,128], index: 5, kind: input, shape index: {}]   ;;  %s3926_s6 = inlined_call_operand.vmem [shape: f32[1,128], index: 6, kind: input, shape index: {}]   ;;  %s3927_s7 = inlined_call_operand.hbm [shape: f32[1,32], index: 7, kind: output, shape index: {}]  }
   0x1   :  { %13 = vsyncpa [#allocation7], 0 }
   0x2   :  { %14 = vsyncpa [#allocation5], 0  ;;  %s3188_s24 = smov [#allocation6]  }
   0x3   :  { %s38_s25 = sshll.u32 %s3188_s24, 4  ;;  %s39_s25 = int_to_ptr.vmem [resolvable:$true] %s38_s25 }
   0x4   :  { %s3110_s26 = scalar_lea.vmem %s39_s25, 1024  ;;  %p3115_p1 = scmp.lt.s32.totalorder %s39_s25, %s39_s25 }
   0x5   :  { %p3111_p0 = scmp.ne.s32.totalorder %s39_s25, %s3110_s26  ;;  %p3116_p2 = scmp.lt.s32.totalorder %s3110_s26, %s3110_s26 }
   0x7   :  { %p3117_p3 = por %p3116_p2, %p3115_p1 }
   0x9   :  { %p3118_p4 = pnand %p3117_p3, %p3111_p0 }
   0xb   :  { %3121 = shalt.err (!%p3118_p4)
}
   0xc   :  { %s3189_s27 = smov 128   ;;  %s3190_s28 = smov 8  }
   0xd   :  { %44 = dma.hbm_to_vmem [thread:$0]  %s3924_s4, 1024, %s39_s25, [#allocation7], %s3189_s27, %s3189_s27, %s3190_s28  }
   0xe   :  { %s3191_s8 = smov [#allocation3]  }
   0xf   :  { %s24_s9 = sshll.u32 %s3191_s8, 4  ;;  %s25_s9 = int_to_ptr.vmem [resolvable:$true] %s24_s9 }
  0x10   :  { %s3130_s10 = scalar_lea.vmem %s25_s9, 2048  ;;  %p3135_p6 = scmp.lt.s32.totalorder %s25_s9, %s25_s9 }
  0x11   :  { %p3131_p5 = scmp.ne.s32.totalorder %s25_s9, %s3130_s10  ;;  %p3136_p7 = scmp.lt.s32.totalorder %s3130_s10, %s3130_s10 }
  0x13   :  { %p3137_p8 = por %p3136_p7, %p3135_p6 }
  0x15   :  { %p3138_p9 = pnand %p3137_p8, %p3131_p5 }
  0x17   :  { %3141 = shalt.err (!%p3138_p9)
}
  0x18   :  { %s3192_s11 = smov 256   ;;  %s3193_s12 = smov 16  }
  0x19   :  { %30 = dma.hbm_to_vmem [thread:$0]  %s3922_s2, 2048, %s25_s9, [#allocation4], %s3192_s11, %s3192_s11, %s3193_s12  }
  0x1a   :  { %s3194_s15 = smov [#allocation8]  }
  0x1b   :  { %s50_s16 = sshll.u32 %s3194_s15, 4  ;;  %s51_s16 = int_to_ptr.vmem [resolvable:$true] %s50_s16 }
  0x1c   :  { %s3150_s4 = scalar_lea.vmem %s51_s16, 512  ;;  %p3155_p11 = scmp.lt.s32.totalorder %s51_s16, %s51_s16 }
  0x1d   :  { %p3151_p10 = scmp.ne.s32.totalorder %s51_s16, %s3150_s4  ;;  %p3156_p12 = scmp.lt.s32.totalorder %s3150_s4, %s3150_s4 }
  0x1f   :  { %p3157_p13 = por %p3156_p12, %p3155_p11 }
  0x21   :  { %p3158_p0 = pnand %p3157_p13, %p3151_p10 }
  0x23   :  { %3161 = shalt.err (!%p3158_p0)
}
  0x24   :  { %56 = dma.hbm_to_vmem [thread:$0]  %s3925_s5, 512, %s51_s16, [#allocation7], %s3189_s27, %s3189_s27, %s3190_s28  }
  0x25   :  { %3182 = dma.done.wait [#allocation4], 2048  }
  0x26   :  { %3183 = vsyncadd [#allocation4], 4294965248 }
  0x27   :  { %3184 = dma.done.wait [#allocation7], 1536  }
  0x28   :  { %3185 = vsyncadd [#allocation7], 4294965760  ;;  %v3195_v0 = vmov 0.0   ;;  %v3196_v1 = vmov 0   ;;  %v3253_v2 = vld [vmem:[#allocation3 + $0x78] sm:$0xff]  ;;  %v3255_v3 = vld [vmem:[#allocation3 + $0x70] sm:$0xff]  ;;  %v76_v19 = vlaneseq }
  0x29   :  { %202 = vmatprep.mubr.f32.mxu0 %v3195_v0  ;;  %2944 = vset.pattern.permute.xlu0 %v3196_v1  ;;  %v3257_v4 = vld [vmem:[#allocation3 + $0x68] sm:$0xff]  ;;  %v3260_v5 = vld [vmem:[#allocation3 + $0x60] sm:$0xff]  ;;  %v3263_v6 = vld [vmem:[#allocation3 + $0x58] sm:$0xff]  ;;  %v3197_v34 = vmov 1966171168   ;;  %vm3199_vm0 = vmmov 0  }
  0x2a   :  { %2690 = vmatprep.subr.mxu1 %v3195_v0  ;;  %154 = vmatprep.subr.mxu0 %v3253_v2  ;;  %v3266_v7 = vld [vmem:[#allocation3 + $0x50] sm:$0xff]  ;;  %v3269_v8 = vld [vmem:[#allocation3 + $0x48] sm:$0xff]  ;;  %v3272_v9 = vld [vmem:[#allocation3 + $0x40] sm:$0xff]  ;;  %v77_v20 = vshrl.u32 %v76_v19, 7  ;;  %v213_v35 = vunpack.c.l.s4 %v3197_v34  ;;  %vm134_vm1 = vcmask 523264   ;;  %s3200_s23 = smov 32  }
  0x2b   :  { %155 = vmatpush1.msra.mxu0 %v3255_v3  ;;  %v68_v10 = vld [vmem:[%s3920_s0] sm:$0xff]  ;;  %v3278_v11 = vld [vmem:[#allocation3 + $0x38] sm:$0xff]  ;;  %v3284_v13 = vld [vmem:[#allocation3 + $0x28] sm:$0xff]  ;;  %2706 = vmatprep.mubr.msk.f32.mxu1 %vm3199_vm0, %v3195_v0  ;;  %vm330_vm2 = vcmask 261120   ;;  %vm2522_vm3 = vcmask 253952  }
  0x2c   :  { %156 = vmatprep.subr.mxu0 %v3257_v4  ;;  %72 = vperm.xlu0 %2944, %v68_v10   ;;  %v3281_v12 = vld [vmem:[#allocation3 + $0x30] sm:$0xff]  ;;  %v3287_v14 = vld [vmem:[#allocation3 + $0x20] sm:$0xff]  ;;  %v3290_v15 = vld [vmem:[#allocation3 + $0x18] sm:$0xff]  ;;  %v3306_v21 = vsub.s32 0, %v77_v20  ;;  %v82_v22 = vsub.s32 1, %v77_v20  ;;  %v214_v36 = vunpack.c.0.s8 %v213_v35 }
  0x2d   :  { %157 = vmatpush1.msra.mxu0 %v3260_v5  ;;  %v3293_v16 = vld [vmem:[#allocation3 + $0x10] sm:$0xff]  ;;  %v3296_v17 = vld [vmem:[#allocation3 + $0x8] sm:$0xff]  ;;  %v3299_v18 = vld [vmem:[#allocation3] sm:$0xff] }
  0x2e   :  { %158 = vmatprep.subr.mxu0 %v3263_v6  ;;  %v69_v23 = vld [vmem:[%s3921_s1] sm:$0x3]  ;;  %v3316_v38 = vsub.s32 %v214_v36, %v77_v20  ;;  %s3198_s1 = smov 64   ;;  %v3325_v53 = vld [vmem:[#allocation6 + $0x38] sm:$0xff]  ;;  %v3333_v56 = vld [vmem:[#allocation6 + $0x28] sm:$0xff] }
  0x2f   :  { %159 = vmatpush1.msra.mxu0 %v3266_v7  ;;  %v88_v24 = vld [vmem:[%s3923_s3] sm:$0x3]  ;;  %v79_v25 = vrot.slane %v69_v23, %v3306_v21  ;;  %v83_v26 = vrot.slane %v69_v23, %v82_v22  ;;  %2691 = vmatpush3.msra.mxu1 %v3325_v53  ;;  %v3330_v55 = vld [vmem:[#allocation8 + $0x18] sm:$0xff]  ;;  %v3340_v58 = vld [vmem:[#allocation8 + $0x8] sm:$0xff] }
  0x30   :  { %160 = vmatprep.subr.mxu0 %v3269_v8  ;;  %v93_v27 = vrot.slane %v88_v24, %v3306_v21  ;;  %v97_v28 = vrot.slane %v88_v24, %v82_v22  ;;  %v3327_v54 = vld [vmem:[#allocation6 + $0x30] sm:$0xff]  ;;  %2692 = vmatprep.subr.mxu1 %v3195_v0  ;;  %v3343_v59 = vld [vmem:[#allocation6 + $0x20] sm:$0xff]  ;;  %v3349_v60 = vld [vmem:[#allocation6 + $0x18] sm:$0xff] }
  0x31   :  { %161 = vmatpush1.msra.mxu0 %v3272_v9  ;;  %v3336_v57 = vld [vmem:[#allocation8 + $0x10] sm:$0xff]  ;;  %2693 = vmatpush3.msra.mxu1 %v3327_v54  ;;  %v3359_v62 = vld [vmem:[#allocation6 + $0x8] sm:$0xff]  ;;  %v3369_v19 = vld [vmem:[#allocation6] sm:$0xff] }
  0x32   :  { %162 = vmatprep.subr.mxu0 %v3278_v11  ;;  %2694 = vmatprep.subr.mxu1 %v3195_v0  ;;  %v3355_v61 = vld [vmem:[#allocation6 + $0x10] sm:$0xff]  ;;  %v3372_v20 = vld [vmem:[#allocation8] sm:$0xff] }
  0x33   :  { %163 = vmatpush1.msra.mxu0 %v3281_v12  ;;  %2695 = vmatpush3.msra.mxu1 %v3333_v56 }
  0x34   :  { %164 = vmatprep.subr.mxu0 %v3284_v13  ;;  %2696 = vmatprep.subr.mxu1 %v3195_v0 }
  0x35   :  { %165 = vmatpush1.msra.mxu0 %v3287_v14  ;;  %2697 = vmatpush3.msra.mxu1 %v3343_v59 }
  0x36   :  { %166 = vmatprep.subr.mxu0 %v3290_v15  ;;  %2698 = vmatprep.subr.mxu1 %v3195_v0 }
  0x37   :  { %167 = vmatpush1.msra.mxu0 %v3293_v16  ;;  %2699 = vmatpush3.msra.mxu1 %v3349_v60 }
  0x38   :  { %168 = vmatprep.subr.mxu0 %v3296_v17  ;;  %2700 = vmatprep.subr.mxu1 %v3195_v0 }
  0x39   :  { %169 = vmatpush1.msra.mxu0 %v3299_v18  ;;  %2701 = vmatpush3.msra.mxu1 %v3355_v61 }
  0x3a   :  { %203 = vmatmul.mubr.f32.vlgmr.msra.gmra.mxu0 %v3195_v0  ;;  %2709 = vmatprep.subr.mxu0 %v3195_v0 }
  0x3b   :  { %2710 = vmatpush3.msra.mxu0 %v3330_v55  ;;  %2702 = vmatprep.subr.mxu1 %v3195_v0 }
  0x3c   :  { %2711 = vmatprep.subr.mxu0 %v3195_v0  ;;  %2703 = vmatpush3.msra.mxu1 %v3359_v62 }
  0x3d   :  { %2712 = vmatpush3.msra.mxu0 %v3336_v57  ;;  %2704 = vmatprep.subr.mxu1 %v3195_v0 }
  0x3e   :  { %2713 = vmatprep.subr.mxu0 %v3195_v0  ;;  %2705 = vmatpush3.msra.mxu1 %v3369_v19 }
  0x3f   :  { %2714 = vmatpush3.msra.mxu0 %v3340_v58  ;;  %2717 = vmatprep.mubr.msk.f32.mxu0 %vm3199_vm0, %v3195_v0 }
  0x40   :  { %2715 = vmatprep.subr.mxu0 %v3195_v0  ;;  %446 = vmatprep.subr.mxu1 %v3253_v2 }
  0x41   :  { %2716 = vmatpush3.msra.mxu0 %v3372_v20 }
  0x42   :  { %2718 = vmatmul.mubr.f32.vlgmr.msra.gmra.mxu0 %v3195_v0  ;;  %2720 = vmatprep.subr.mxu0 %v3195_v0 }
  0x43   :  { %2721 = vmatpush3.msra.mxu0 %v3325_v53  ;;  %2736 = vmatprep.mubr.msk.f32.mxu0 %vm3199_vm0, %v3195_v0 }
  0x44   :  { %2722 = vmatprep.subr.mxu0 %v3195_v0 }
  0x45   :  { %2723 = vmatpush3.msra.mxu0 %v3327_v54 }
  0x46   :  { %2724 = vmatprep.subr.mxu0 %v3195_v0 }
  0x47   :  { %2725 = vmatpush3.msra.mxu0 %v3333_v56 }
  0x48   :  { %2726 = vmatprep.subr.mxu0 %v3195_v0 }
  0x49   :  { %2727 = vmatpush3.msra.mxu0 %v3343_v59 }
  0x4a   :  { %2728 = vmatprep.subr.mxu0 %v3195_v0 }
  0x4b   :  { %2729 = vmatpush3.msra.mxu0 %v3349_v60 }
  0x4c   :  { %2730 = vmatprep.subr.mxu0 %v3195_v0 }
  0x4d   :  { %2731 = vmatpush3.msra.mxu0 %v3355_v61 }
  0x4e   :  { %2732 = vmatprep.subr.mxu0 %v3195_v0 }
  0x4f   :  { %2733 = vmatpush3.msra.mxu0 %v3359_v62 }
  0x50   :  { %2734 = vmatprep.subr.mxu0 %v3195_v0 }
  0x51   :  { %2735 = vmatpush3.msra.mxu0 %v3369_v19 }
  0x52   :  { %744 = vmatprep.subr.mxu0 %v3253_v2 }
  0xa7   :  { %v73_v29 = vpop.permute.xlu0 %72 }
  0xa8   :  { %v86_v30 = vmul.f32 %v79_v25, %v73_v29  ;;  %v87_v31 = vmul.f32 %v83_v26, %v73_v29 }
  0xaa   :  { %v100_v32 = vadd.f32 %v93_v27, %v86_v30  ;;  %v101_v33 = vadd.f32 %v97_v28, %v87_v31  ;;  %v3434_v28 = vld [vmem:[%s3926_s6] sm:$0x1] }
  0xac   :  { %102 = vst [vmem:[#allocation2] sm:$0xff] %v100_v32  ;;  %103 = vst [vmem:[#allocation2 + $0x8] sm:$0xff] %v101_v33 }
  0xb3   :  { %v133_v42 = vld [vmem:[#allocation2] ss:$8 sm:$0x3] }
  0xfa   :  { %v204_v37 = vpop.f32.mrf.mxu0 }
  0xfc   :  { %v206_v39 = vpop.f32.mrf.mxu0 }
  0xfd   :  { %v211_v40 = vcombine.low %v204_v37, %v206_v39 }
  0xff   :  { %v218_v41 = vrot.slane %v211_v40, %v3316_v38  ;;  %v429_v40 = vld [vmem:[#allocation2 + $0x1] ss:$8 sm:$0x3] }
 0x101   :  { %v225_v43 = vrot.slane %v218_v41, %v3316_v38 }
 0x102   :  { %v399_v26 = vpop.f32.mrf.mxu0 }
 0x103   :  { %v227_v44 = vadd.f32 %v225_v43, %v133_v42 }
 0x104   :  { %v2719_v27 = vpop.f32.mrf.mxu0 }
 0x105   :  { %235 = vrot.lane.b32.xlu0 %v227_v44, %s3198_s1  ;;  %v2540_v45 = vmul.f32 -1.442695, %v227_v44 }
 0x107   :  { %2945 = vpow2.f32 %v2540_v45 }
 0x114   :  { %v2946_v46 = vpop.eup %2945 }
 0x115   :  { %v231_v47 = vadd.f32 1.0, %v2946_v46 }
 0x117   :  { %2947 = vrcp.f32 %v231_v47 }
 0x124   :  { %v3321_v50 = vpop.eup %2947 }
 0x125   :  { %v240_v63 = vmul.f32 0.0, %v3321_v50  ;;  %v249_v23 = vrot.slane %v3321_v50, 1 }
 0x177   :  { %v236_v48 = vpop.permute.xlu0 %235 }
 0x178   :  { %v237_v49 = vrot.slane %v236_v48, 1 }
 0x17a   :  { %2949 = vtanh.f32 %v237_v49 }
 0x187   :  { %v2950_v51 = vpop.eup %2949 }
 0x188   :  { %v241_v52 = vmul.f32 %v2950_v51, %v3321_v50 }
 0x18a   :  { %243 = vrot.lane.b32.xlu1 %v241_v52, %s3198_s1 }
 0x1fc   :  { %v244_v1 = vpop.permute.xlu1 %243 }
 0x1fd   :  { %v3366_v10 = vadd.f32 %v244_v1, %v240_v63 }
 0x1ff   :  { %2951 = vtanh.f32 %v3366_v10 }
 0x20c   :  { %v2952_v22 = vpop.eup %2951 }
 0x20d   :  { %252 = vrot.lane.b32.xlu1 %v2952_v22, %s3198_s1 }
 0x27f   :  { %v253_v24 = vpop.permute.xlu1 %252 }
 0x280   :  { %v255_v25 = vmul.f32 %v253_v24, %v249_v23 }
 0x282   :  { %2707 = vmatmul.mubr.msk.f32.vlgmr.msra.gmra.mxu1 %vm134_vm1, %v255_v25 }
 0x283   :  { %447 = vmatpush1.msra.mxu1 %v3255_v3  ;;  %494 = vmatprep.mubr.f32.mxu1 %v3195_v0 }
 0x284   :  { %448 = vmatprep.subr.mxu1 %v3257_v4 }
 0x285   :  { %449 = vmatpush1.msra.mxu1 %v3260_v5 }
 0x286   :  { %450 = vmatprep.subr.mxu1 %v3263_v6 }
 0x287   :  { %451 = vmatpush1.msra.mxu1 %v3266_v7 }
 0x288   :  { %452 = vmatprep.subr.mxu1 %v3269_v8 }
 0x289   :  { %453 = vmatpush1.msra.mxu1 %v3272_v9 }
 0x28a   :  { %454 = vmatprep.subr.mxu1 %v3278_v11 }
 0x28b   :  { %455 = vmatpush1.msra.mxu1 %v3281_v12 }
 0x28c   :  { %456 = vmatprep.subr.mxu1 %v3284_v13 }
 0x28d   :  { %457 = vmatpush1.msra.mxu1 %v3287_v14 }
 0x28e   :  { %458 = vmatprep.subr.mxu1 %v3290_v15 }
 0x28f   :  { %459 = vmatpush1.msra.mxu1 %v3293_v16 }
 0x290   :  { %460 = vmatprep.subr.mxu1 %v3296_v17 }
 0x291   :  { %461 = vmatpush1.msra.mxu1 %v3299_v18 }
 0x292   :  { %2543 = vmatmul.mubr.msk.f32.vlgmr.msra.gmra.mxu1 %vm134_vm1, %v255_v25  ;;  %2739 = vmatprep.subr.mxu1 %v3195_v0 }
 0x293   :  { %2740 = vmatpush3.msra.mxu1 %v3330_v55  ;;  %2747 = vmatprep.mubr.msk.f32.mxu1 %vm3199_vm0, %v3195_v0 }
 0x294   :  { %2741 = vmatprep.subr.mxu1 %v3195_v0 }
 0x295   :  { %2742 = vmatpush3.msra.mxu1 %v3336_v57 }
 0x296   :  { %2743 = vmatprep.subr.mxu1 %v3195_v0 }
 0x297   :  { %2744 = vmatpush3.msra.mxu1 %v3340_v58 }
 0x298   :  { %2745 = vmatprep.subr.mxu1 %v3195_v0 }
 0x299   :  { %2746 = vmatpush3.msra.mxu1 %v3372_v20 }
 0x29a   :  { %2750 = vmatprep.subr.mxu1 %v3195_v0 }
 0x342   :  { %v325_v29 = vpop.f32.mrf.mxu1 }
 0x343   :  { %v329_v30 = vadd.f32 %v325_v29, %v3434_v28 }
 0x344   :  { %v2708_v31 = vpop.f32.mrf.mxu1 }
 0x345   :  { %v403_v32 = vadd.f32 %v399_v26, %v329_v30 }
 0x347   :  { %2953 = vtanh.f32 %v403_v32  ;;  %v2542_v42 = vmul.f32 -1.442695, %v403_v32 }
 0x349   :  { %2955 = vpow2.f32 %v2542_v42 }
 0x352   :  { %v496_v33 = vpop.f32.mrf.mxu1 }
 0x354   :  { %v2954_v34 = vpop.eup %2953  ;;  %v498_v35 = vpop.f32.mrf.mxu1 }
 0x355   :  { %v503_v36 = vcombine.low %v496_v33, %v498_v35  ;;  %413 = vrot.lane.b32.xlu0 %v2954_v34, %s3200_s23 }
 0x356   :  { %v2956_v43 = vpop.eup %2955 }
 0x357   :  { %v510_v37 = vrot.slane %v503_v36, %v3316_v38  ;;  %v407_v44 = vadd.f32 1.0, %v2956_v43 }
 0x359   :  { %v517_v39 = vrot.slane %v510_v37, %v3316_v38  ;;  %2957 = vrcp.f32 %v407_v44 }
 0x35b   :  { %v519_v41 = vadd.f32 %v517_v39, %v429_v40 }
 0x35d   :  { %527 = vrot.lane.b32.xlu1 %v519_v41, %s3198_s1  ;;  %v2544_v45 = vmul.f32 -1.442695, %v519_v41 }
 0x35f   :  { %2959 = vpow2.f32 %v2544_v45 }
 0x366   :  { %v2958_v46 = vpop.eup %2957 }
 0x367   :  { %v411_v23 = vmul.f32 0.0, %v2958_v46 }
 0x36c   :  { %v2960_v49 = vpop.eup %2959 }
 0x36d   :  { %v523_v50 = vadd.f32 1.0, %v2960_v49 }
 0x36f   :  { %2961 = vrcp.f32 %v523_v50 }
 0x37c   :  { %v2962_v63 = vpop.eup %2961 }
 0x37d   :  { %v532_v27 = vmul.f32 %v2962_v63, %v3366_v10  ;;  %v541_v35 = vrot.slane %v2962_v63, 1 }
 0x3c7   :  { %v414_v47 = vpop.permute.xlu0 %413 }
 0x3c8   :  { %v416_v48 = vmul.f32 %v2958_v46, %v414_v47 }
 0x3ca   :  { %418 = vrot.lane.b32.xlu0 %v416_v48, %s3200_s23 }
 0x3cf   :  { %v528_v51 = vpop.permute.xlu1 %527 }
 0x3d0   :  { %v529_v52 = vrot.slane %v528_v51, 1 }
 0x3d2   :  { %2963 = vtanh.f32 %v529_v52 }
 0x3df   :  { %v2964_v1 = vpop.eup %2963 }
 0x3e0   :  { %v533_v22 = vmul.f32 %v2964_v1, %v2962_v63 }
 0x3e2   :  { %535 = vrot.lane.b32.xlu1 %v533_v22, %s3198_s1 }
 0x43c   :  { %v419_v24 = vpop.permute.xlu0 %418 }
 0x43d   :  { %v3443_v25 = vadd.f32 %v419_v24, %v411_v23 }
 0x43f   :  { %2965 = vtanh.f32 %v3443_v25 }
 0x44c   :  { %v2966_v26 = vpop.eup %2965 }
 0x44d   :  { %424 = vrot.lane.b32.xlu0 %v2966_v26, %s3200_s23 }
 0x454   :  { %v536_v29 = vpop.permute.xlu1 %535 }
 0x455   :  { %v3448_v30 = vadd.f32 %v536_v29, %v532_v27 }
 0x457   :  { %2967 = vtanh.f32 %v3448_v30 }
 0x464   :  { %v2968_v31 = vpop.eup %2967 }
 0x465   :  { %544 = vrot.lane.b32.xlu1 %v2968_v31, %s3198_s1 }
 0x4bf   :  { %v425_v32 = vpop.permute.xlu0 %424 }
 0x4c0   :  { %v427_v33 = vmul.f32 %v2958_v46, %v425_v32  ;;  %v727_v46 = vld [vmem:[#allocation2 + $0x2] ss:$8 sm:$0x3] }
 0x4c2   :  { %v626_v34 = vrot.slane %v427_v33, %v3306_v21 }
 0x4c4   :  { %627 = vrot.lane.b32.xlu0 %v626_v34, %s3198_s1 }
 0x4d7   :  { %v545_v36 = vpop.permute.xlu1 %544 }
 0x4d8   :  { %v547_v37 = vmul.f32 %v545_v36, %v541_v35 }
 0x4da   :  { %2737 = vmatmul.mubr.msk.f32.vlgmr.msra.gmra.mxu0 %vm134_vm1, %v547_v37 }
 0x4db   :  { %745 = vmatpush1.msra.mxu0 %v3255_v3  ;;  %792 = vmatprep.mubr.f32.mxu0 %v3195_v0 }
 0x4dc   :  { %746 = vmatprep.subr.mxu0 %v3257_v4 }
 0x4dd   :  { %747 = vmatpush1.msra.mxu0 %v3260_v5 }
 0x4de   :  { %748 = vmatprep.subr.mxu0 %v3263_v6 }
 0x4df   :  { %749 = vmatpush1.msra.mxu0 %v3266_v7 }
 0x4e0   :  { %750 = vmatprep.subr.mxu0 %v3269_v8 }
 0x4e1   :  { %751 = vmatpush1.msra.mxu0 %v3272_v9 }
 0x4e2   :  { %752 = vmatprep.subr.mxu0 %v3278_v11 }
 0x4e3   :  { %753 = vmatpush1.msra.mxu0 %v3281_v12 }
 0x4e4   :  { %754 = vmatprep.subr.mxu0 %v3284_v13 }
 0x4e5   :  { %755 = vmatpush1.msra.mxu0 %v3287_v14 }
 0x4e6   :  { %756 = vmatprep.subr.mxu0 %v3290_v15 }
 0x4e7   :  { %757 = vmatpush1.msra.mxu0 %v3293_v16 }
 0x4e8   :  { %758 = vmatprep.subr.mxu0 %v3296_v17 }
 0x4e9   :  { %759 = vmatpush1.msra.mxu0 %v3299_v18 }
 0x4ea   :  { %2548 = vmatmul.mubr.msk.f32.vlgmr.msra.gmra.mxu0 %vm134_vm1, %v547_v37  ;;  %2769 = vmatprep.subr.mxu0 %v3195_v0 }
 0x4eb   :  { %2770 = vmatpush3.msra.mxu0 %v3330_v55  ;;  %2777 = vmatprep.mubr.msk.f32.mxu0 %vm3199_vm0, %v3195_v0 }
 0x4ec   :  { %2771 = vmatprep.subr.mxu0 %v3195_v0 }
 0x4ed   :  { %2772 = vmatpush3.msra.mxu0 %v3336_v57 }
 0x4ee   :  { %2773 = vmatprep.subr.mxu0 %v3195_v0 }
 0x4ef   :  { %2774 = vmatpush3.msra.mxu0 %v3340_v58 }
 0x4f0   :  { %2775 = vmatprep.subr.mxu0 %v3195_v0 }
 0x4f1   :  { %2776 = vmatpush3.msra.mxu0 %v3372_v20 }
 0x4f2   :  { %2780 = vmatprep.subr.mxu0 %v3195_v0 }
 0x536   :  { %v628_v10 = vpop.permute.xlu0 %627 }
 0x537   :  { %2748 = vmatmul.mubr.msk.f32.vlgmr.msra.gmra.mxu1 %vm330_vm2, %v628_v10 }
 0x538   :  { %2751 = vmatpush3.msra.mxu1 %v3325_v53  ;;  %2766 = vmatprep.mubr.msk.f32.mxu1 %vm3199_vm0, %v3195_v0 }
 0x539   :  { %2752 = vmatprep.subr.mxu1 %v3195_v0 }
 0x53a   :  { %2753 = vmatpush3.msra.mxu1 %v3327_v54 }
 0x53b   :  { %2754 = vmatprep.subr.mxu1 %v3195_v0 }
 0x53c   :  { %2755 = vmatpush3.msra.mxu1 %v3333_v56 }
 0x53d   :  { %2756 = vmatprep.subr.mxu1 %v3195_v0 }
 0x53e   :  { %2757 = vmatpush3.msra.mxu1 %v3343_v59 }
 0x53f   :  { %2758 = vmatprep.subr.mxu1 %v3195_v0 }
 0x540   :  { %2759 = vmatpush3.msra.mxu1 %v3349_v60 }
 0x541   :  { %2760 = vmatprep.subr.mxu1 %v3195_v0 }
 0x542   :  { %2761 = vmatpush3.msra.mxu1 %v3355_v61 }
 0x543   :  { %2762 = vmatprep.subr.mxu1 %v3195_v0 }
 0x544   :  { %2763 = vmatpush3.msra.mxu1 %v3359_v62 }
 0x545   :  { %2764 = vmatprep.subr.mxu1 %v3195_v0 }
 0x546   :  { %2765 = vmatpush3.msra.mxu1 %v3369_v19 }
 0x547   :  { %1042 = vmatprep.subr.mxu1 %v3253_v2 }
 0x59a   :  { %v617_v39 = vpop.f32.mrf.mxu0 }
 0x59b   :  { %v621_v48 = vadd.f32 %v617_v39, %v3434_v28 }
 0x59c   :  { %v2738_v40 = vpop.f32.mrf.mxu0 }
 0x5aa   :  { %v794_v41 = vpop.f32.mrf.mxu0 }
 0x5ac   :  { %v796_v42 = vpop.f32.mrf.mxu0 }
 0x5ad   :  { %v801_v43 = vcombine.low %v794_v41, %v796_v42 }
 0x5af   :  { %v808_v44 = vrot.slane %v801_v43, %v3316_v38 }
 0x5b1   :  { %v815_v45 = vrot.slane %v808_v44, %v3316_v38 }
 0x5b3   :  { %v817_v47 = vadd.f32 %v815_v45, %v727_v46 }
 0x5b5   :  { %825 = vrot.lane.b32.xlu0 %v817_v47, %s3198_s1  ;;  %v2549_v63 = vmul.f32 -1.442695, %v817_v47 }
 0x5f7   :  { %v697_v49 = vpop.f32.mrf.mxu1 }
 0x5f8   :  { %v701_v50 = vadd.f32 %v697_v49, %v621_v48 }
 0x5f9   :  { %v2749_v51 = vpop.f32.mrf.mxu1 }
 0x5fa   :  { %2969 = vtanh.f32 %v701_v50  ;;  %v2547_v31 = vmul.f32 -1.442695, %v701_v50 }
 0x5fb   :  { %2971 = vpow2.f32 %v2549_v63 }
 0x607   :  { %v2970_v52 = vpop.eup %2969 }
 0x608   :  { %711 = vrot.lane.b32.xlu1 %v2970_v52, %s3200_s23  ;;  %v2972_v1 = vpop.eup %2971 }
 0x609   :  { %v821_v22 = vadd.f32 1.0, %v2972_v1 }
 0x60b   :  { %2973 = vrcp.f32 %v821_v22 }
 0x618   :  { %v2974_v26 = vpop.eup %2973 }
 0x619   :  { %v830_v37 = vmul.f32 %v2974_v26, %v3448_v30  ;;  %v839_v45 = vrot.slane %v2974_v26, 1 }
 0x627   :  { %v826_v23 = vpop.permute.xlu0 %825 }
 0x628   :  { %v827_v24 = vrot.slane %v826_v23, 1 }
 0x62a   :  { %2975 = vtanh.f32 %v827_v24  ;;  %v1025_v24 = vld [vmem:[#allocation2 + $0x3] ss:$8 sm:$0x3] }
 0x62b   :  { %2977 = vpow2.f32 %v2547_v31 }
 0x637   :  { %v2976_v27 = vpop.eup %2975 }
 0x638   :  { %v831_v29 = vmul.f32 %v2976_v27, %v2974_v26  ;;  %v2978_v32 = vpop.eup %2977 }
 0x639   :  { %v705_v33 = vadd.f32 1.0, %v2978_v32 }
 0x63a   :  { %833 = vrot.lane.b32.xlu0 %v831_v29, %s3198_s1 }
 0x63b   :  { %2979 = vrcp.f32 %v705_v33 }
 0x648   :  { %v2980_v34 = vpop.eup %2979 }
 0x649   :  { %v709_v41 = vmul.f32 %v2980_v34, %v3443_v25 }
 0x67a   :  { %v712_v35 = vpop.permute.xlu1 %711 }
 0x67b   :  { %v714_v36 = vmul.f32 %v2980_v34, %v712_v35 }
 0x67d   :  { %716 = vrot.lane.b32.xlu1 %v714_v36, %s3200_s23 }
 0x6ac   :  { %v834_v10 = vpop.permute.xlu0 %833 }
 0x6ad   :  { %v3510_v39 = vadd.f32 %v834_v10, %v830_v37 }
 0x6af   :  { %2981 = vtanh.f32 %v3510_v39 }
 0x6bc   :  { %v2982_v40 = vpop.eup %2981 }
 0x6bd   :  { %842 = vrot.lane.b32.xlu0 %v2982_v40, %s3198_s1 }
 0x6ef   :  { %v717_v42 = vpop.permute.xlu1 %716 }
 0x6f0   :  { %v3515_v43 = vadd.f32 %v717_v42, %v709_v41 }
 0x6f2   :  { %2983 = vtanh.f32 %v3515_v43 }
 0x6ff   :  { %v2984_v44 = vpop.eup %2983 }
 0x700   :  { %722 = vrot.lane.b32.xlu1 %v2984_v44, %s3200_s23 }
 0x72f   :  { %v843_v30 = vpop.permute.xlu0 %842 }
 0x730   :  { %v845_v46 = vmul.f32 %v843_v30, %v839_v45 }
 0x732   :  { %2767 = vmatmul.mubr.msk.f32.vlgmr.msra.gmra.mxu1 %vm134_vm1, %v845_v46 }
 0x733   :  { %1043 = vmatpush1.msra.mxu1 %v3255_v3  ;;  %1090 = vmatprep.mubr.f32.mxu1 %v3195_v0 }
 0x734   :  { %1044 = vmatprep.subr.mxu1 %v3257_v4 }
 0x735   :  { %1045 = vmatpush1.msra.mxu1 %v3260_v5 }
 0x736   :  { %1046 = vmatprep.subr.mxu1 %v3263_v6 }
 0x737   :  { %1047 = vmatpush1.msra.mxu1 %v3266_v7 }
 0x738   :  { %1048 = vmatprep.subr.mxu1 %v3269_v8 }
 0x739   :  { %1049 = vmatpush1.msra.mxu1 %v3272_v9 }
 0x73a   :  { %1050 = vmatprep.subr.mxu1 %v3278_v11 }
 0x73b   :  { %1051 = vmatpush1.msra.mxu1 %v3281_v12 }
 0x73c   :  { %1052 = vmatprep.subr.mxu1 %v3284_v13 }
 0x73d   :  { %1053 = vmatpush1.msra.mxu1 %v3287_v14 }
 0x73e   :  { %1054 = vmatprep.subr.mxu1 %v3290_v15 }
 0x73f   :  { %1055 = vmatpush1.msra.mxu1 %v3293_v16 }
 0x740   :  { %1056 = vmatprep.subr.mxu1 %v3296_v17 }
 0x741   :  { %1057 = vmatpush1.msra.mxu1 %v3299_v18 }
 0x742   :  { %2553 = vmatmul.mubr.msk.f32.vlgmr.msra.gmra.mxu1 %vm134_vm1, %v845_v46  ;;  %2799 = vmatprep.subr.mxu1 %v3195_v0 }
 0x743   :  { %2800 = vmatpush3.msra.mxu1 %v3330_v55  ;;  %2807 = vmatprep.mubr.msk.f32.mxu1 %vm3199_vm0, %v3195_v0 }
 0x744   :  { %2801 = vmatprep.subr.mxu1 %v3195_v0 }
 0x745   :  { %2802 = vmatpush3.msra.mxu1 %v3336_v57 }
 0x746   :  { %2803 = vmatprep.subr.mxu1 %v3195_v0 }
 0x747   :  { %2804 = vmatpush3.msra.mxu1 %v3340_v58 }
 0x748   :  { %2805 = vmatprep.subr.mxu1 %v3195_v0 }
 0x749   :  { %2806 = vmatpush3.msra.mxu1 %v3372_v20 }
 0x74a   :  { %2810 = vmatprep.subr.mxu1 %v3195_v0 }
 0x772   :  { %v723_v25 = vpop.permute.xlu1 %722 }
 0x773   :  { %v725_v47 = vmul.f32 %v2980_v34, %v723_v25 }
 0x775   :  { %v924_v48 = vrot.slane %v725_v47, %v3306_v21 }
 0x777   :  { %925 = vrot.lane.b32.xlu1 %v924_v48, %s3198_s1 }
 0x7e9   :  { %v926_v49 = vpop.permute.xlu1 %925 }
 0x7ea   :  { %2778 = vmatmul.mubr.msk.f32.vlgmr.msra.gmra.mxu0 %vm330_vm2, %v926_v49 }
 0x7eb   :  { %2781 = vmatpush3.msra.mxu0 %v3325_v53  ;;  %2796 = vmatprep.mubr.msk.f32.mxu0 %vm3199_vm0, %v3195_v0 }
 0x7ec   :  { %2782 = vmatprep.subr.mxu0 %v3195_v0 }
 0x7ed   :  { %2783 = vmatpush3.msra.mxu0 %v3327_v54 }
 0x7ee   :  { %2784 = vmatprep.subr.mxu0 %v3195_v0 }
 0x7ef   :  { %2785 = vmatpush3.msra.mxu0 %v3333_v56 }
 0x7f0   :  { %2786 = vmatprep.subr.mxu0 %v3195_v0 }
 0x7f1   :  { %2787 = vmatpush3.msra.mxu0 %v3343_v59 }
 0x7f2   :  { %v915_v50 = vpop.f32.mrf.mxu1  ;;  %2788 = vmatprep.subr.mxu0 %v3195_v0 }
 0x7f3   :  { %2789 = vmatpush3.msra.mxu0 %v3349_v60  ;;  %v919_v37 = vadd.f32 %v915_v50, %v3434_v28 }
 0x7f4   :  { %v2768_v51 = vpop.f32.mrf.mxu1  ;;  %2790 = vmatprep.subr.mxu0 %v3195_v0 }
 0x7f5   :  { %2791 = vmatpush3.msra.mxu0 %v3355_v61 }
 0x7f6   :  { %2792 = vmatprep.subr.mxu0 %v3195_v0 }
 0x7f7   :  { %2793 = vmatpush3.msra.mxu0 %v3359_v62 }
 0x7f8   :  { %2794 = vmatprep.subr.mxu0 %v3195_v0 }
 0x7f9   :  { %2795 = vmatpush3.msra.mxu0 %v3369_v19 }
 0x7fa   :  { %1340 = vmatprep.subr.mxu0 %v3253_v2 }
 0x802   :  { %v1092_v52 = vpop.f32.mrf.mxu1 }
 0x804   :  { %v1094_v63 = vpop.f32.mrf.mxu1 }
 0x805   :  { %v1099_v1 = vcombine.low %v1092_v52, %v1094_v63 }
 0x807   :  { %v1106_v22 = vrot.slane %v1099_v1, %v3316_v38 }
 0x809   :  { %v1113_v23 = vrot.slane %v1106_v22, %v3316_v38 }
 0x80b   :  { %v1115_v26 = vadd.f32 %v1113_v23, %v1025_v24 }
 0x80d   :  { %1123 = vrot.lane.b32.xlu1 %v1115_v26, %s3198_s1  ;;  %v2554_v27 = vmul.f32 -1.442695, %v1115_v26 }
 0x80f   :  { %2985 = vpow2.f32 %v2554_v27 }
 0x81c   :  { %v2986_v29 = vpop.eup %2985 }
 0x81d   :  { %v1119_v31 = vadd.f32 1.0, %v2986_v29 }
 0x81f   :  { %2987 = vrcp.f32 %v1119_v31 }
 0x82c   :  { %v2988_v34 = vpop.eup %2987 }
 0x82d   :  { %v1128_v44 = vmul.f32 %v2988_v34, %v3510_v39  ;;  %v1137_v52 = vrot.slane %v2988_v34, 1 }
 0x87f   :  { %v1124_v32 = vpop.permute.xlu1 %1123 }
 0x880   :  { %v1125_v33 = vrot.slane %v1124_v32, 1 }
 0x882   :  { %2989 = vtanh.f32 %v1125_v33 }
 0x88f   :  { %v2990_v35 = vpop.eup %2989 }
 0x890   :  { %v1129_v36 = vmul.f32 %v2990_v35, %v2988_v34 }
 0x892   :  { %1131 = vrot.lane.b32.xlu1 %v1129_v36, %s3198_s1 }
 0x8aa   :  { %v995_v10 = vpop.f32.mrf.mxu0 }
 0x8ab   :  { %v999_v40 = vadd.f32 %v995_v10, %v919_v37 }
 0x8ac   :  { %v2779_v41 = vpop.f32.mrf.mxu0 }
 0x8ad   :  { %2991 = vtanh.f32 %v999_v40  ;;  %v2552_v46 = vmul.f32 -1.442695, %v999_v40 }
 0x8ba   :  { %v2992_v42 = vpop.eup %2991 }
 0x8bb   :  { %1009 = vrot.lane.b32.xlu0 %v2992_v42, %s3200_s23 }
 0x904   :  { %v1132_v45 = vpop.permute.xlu1 %1131 }
 0x905   :  { %v3576_v30 = vadd.f32 %v1132_v45, %v1128_v44 }
 0x907   :  { %2993 = vtanh.f32 %v3576_v30 }
 0x908   :  { %2995 = vpow2.f32 %v2552_v46 }
 0x914   :  { %v2994_v25 = vpop.eup %2993 }
 0x915   :  { %1140 = vrot.lane.b32.xlu1 %v2994_v25, %s3198_s1  ;;  %v2996_v47 = vpop.eup %2995 }
 0x916   :  { %v1003_v48 = vadd.f32 1.0, %v2996_v47 }
 0x918   :  { %2997 = vrcp.f32 %v1003_v48  ;;  %v3648_v48 = vld [vmem:[#allocation3 + $0x70] sm:$0xff] }
 0x925   :  { %v2998_v49 = vpop.eup %2997 }
 0x92d   :  { %v1010_v50 = vpop.permute.xlu0 %1009 }
 0x92e   :  { %v1012_v51 = vmul.f32 %v2998_v49, %v1010_v50  ;;  %v3656_v50 = vld [vmem:[#allocation3 + $0x60] sm:$0xff] }
 0x930   :  { %1014 = vrot.lane.b32.xlu0 %v1012_v51, %s3200_s23  ;;  %v3659_v51 = vld [vmem:[#allocation3 + $0x58] sm:$0xff] }
 0x987   :  { %v1141_v39 = vpop.permute.xlu1 %1140 }
 0x988   :  { %v1143_v63 = vmul.f32 %v1141_v39, %v1137_v52  ;;  %v3662_v52 = vld [vmem:[#allocation3 + $0x50] sm:$0xff]  ;;  %v3665_v39 = vld [vmem:[#allocation3 + $0x48] sm:$0xff] }
 0x98a   :  { %2797 = vmatmul.mubr.msk.f32.vlgmr.msra.gmra.mxu0 %vm134_vm1, %v1143_v63 }
 0x98b   :  { %1341 = vmatpush1.msra.mxu0 %v3255_v3  ;;  %1388 = vmatprep.mubr.f32.mxu0 %v3195_v0  ;;  %v1007_v3 = vmul.f32 %v2998_v49, %v3515_v43 }
 0x98c   :  { %1342 = vmatprep.subr.mxu0 %v3257_v4 }
 0x98d   :  { %1343 = vmatpush1.msra.mxu0 %v3260_v5 }
 0x98e   :  { %1344 = vmatprep.subr.mxu0 %v3263_v6 }
 0x98f   :  { %1345 = vmatpush1.msra.mxu0 %v3266_v7 }
 0x990   :  { %1346 = vmatprep.subr.mxu0 %v3269_v8 }
 0x991   :  { %1347 = vmatpush1.msra.mxu0 %v3272_v9 }
 0x992   :  { %1348 = vmatprep.subr.mxu0 %v3278_v11 }
 0x993   :  { %1349 = vmatpush1.msra.mxu0 %v3281_v12 }
 0x994   :  { %1350 = vmatprep.subr.mxu0 %v3284_v13 }
 0x995   :  { %1351 = vmatpush1.msra.mxu0 %v3287_v14 }
 0x996   :  { %1352 = vmatprep.subr.mxu0 %v3290_v15 }
 0x997   :  { %1353 = vmatpush1.msra.mxu0 %v3293_v16 }
 0x998   :  { %1354 = vmatprep.subr.mxu0 %v3296_v17 }
 0x999   :  { %1355 = vmatpush1.msra.mxu0 %v3299_v18  ;;  %v1323_v18 = vld [vmem:[#allocation2 + $0x4] ss:$8 sm:$0x3] }
 0x99a   :  { %2558 = vmatmul.mubr.msk.f32.vlgmr.msra.gmra.mxu0 %vm134_vm1, %v1143_v63  ;;  %2829 = vmatprep.subr.mxu0 %v3195_v0  ;;  %v3668_v63 = vld [vmem:[#allocation3 + $0x40] sm:$0xff] }
 0x99b   :  { %2830 = vmatpush3.msra.mxu0 %v3330_v55  ;;  %2837 = vmatprep.mubr.msk.f32.mxu0 %vm3199_vm0, %v3195_v0 }
 0x99c   :  { %2831 = vmatprep.subr.mxu0 %v3195_v0 }
 0x99d   :  { %2832 = vmatpush3.msra.mxu0 %v3336_v57 }
 0x99e   :  { %2833 = vmatprep.subr.mxu0 %v3195_v0 }
 0x99f   :  { %2834 = vmatpush3.msra.mxu0 %v3340_v58 }
 0x9a0   :  { %2835 = vmatprep.subr.mxu0 %v3195_v0 }
 0x9a1   :  { %2836 = vmatpush3.msra.mxu0 %v3372_v20 }
 0x9a2   :  { %v1015_v4 = vpop.permute.xlu0 %1014  ;;  %2840 = vmatprep.subr.mxu0 %v3195_v0 }
 0x9a3   :  { %v3611_v5 = vadd.f32 %v1015_v4, %v1007_v3  ;;  %v3671_v3 = vld [vmem:[#allocation3 + $0x38] sm:$0xff]  ;;  %v3674_v4 = vld [vmem:[#allocation3 + $0x30] sm:$0xff] }
 0x9a5   :  { %2999 = vtanh.f32 %v3611_v5 }
 0x9b2   :  { %v3000_v6 = vpop.eup %2999 }
 0x9b3   :  { %1020 = vrot.lane.b32.xlu0 %v3000_v6, %s3200_s23  ;;  %v3677_v6 = vld [vmem:[#allocation3 + $0x28] sm:$0xff] }
 0xa25   :  { %v1021_v7 = vpop.permute.xlu0 %1020 }
 0xa26   :  { %v1023_v8 = vmul.f32 %v2998_v49, %v1021_v7  ;;  %v3652_v49 = vld [vmem:[#allocation3 + $0x68] sm:$0xff]  ;;  %v3680_v7 = vld [vmem:[#allocation3 + $0x20] sm:$0xff] }
 0xa28   :  { %v1222_v9 = vrot.slane %v1023_v8, %v3306_v21  ;;  %v3683_v8 = vld [vmem:[#allocation3 + $0x18] sm:$0xff] }
 0xa2a   :  { %1223 = vrot.lane.b32.xlu0 %v1222_v9, %s3198_s1  ;;  %v3686_v9 = vld [vmem:[#allocation3 + $0x10] sm:$0xff] }
 0xa4a   :  { %v1213_v11 = vpop.f32.mrf.mxu0 }
 0xa4b   :  { %v1217_v32 = vadd.f32 %v1213_v11, %v3434_v28  ;;  %v3689_v11 = vld [vmem:[#allocation3 + $0x8] sm:$0xff] }
 0xa4c   :  { %v2798_v12 = vpop.f32.mrf.mxu0 }
 0xa4d   :  { %v3692_v12 = vld [vmem:[#allocation3] sm:$0xff] }
 0xa5a   :  { %v1390_v13 = vpop.f32.mrf.mxu0 }
 0xa5c   :  { %v1392_v14 = vpop.f32.mrf.mxu0 }
 0xa5d   :  { %v1397_v15 = vcombine.low %v1390_v13, %v1392_v14 }
 0xa5f   :  { %v1404_v16 = vrot.slane %v1397_v15, %v3316_v38 }
 0xa61   :  { %v1411_v17 = vrot.slane %v1404_v16, %v3316_v38 }
 0xa63   :  { %v1413_v43 = vadd.f32 %v1411_v17, %v1323_v18 }
 0xa65   :  { %1421 = vrot.lane.b32.xlu0 %v1413_v43, %s3198_s1 }
 0xa9c   :  { %v1224_v1 = vpop.permute.xlu0 %1223 }
 0xa9d   :  { %2808 = vmatmul.mubr.msk.f32.vlgmr.msra.gmra.mxu1 %vm330_vm2, %v1224_v1 }
 0xa9e   :  { %2811 = vmatpush3.msra.mxu1 %v3325_v53  ;;  %2826 = vmatprep.mubr.msk.f32.mxu1 %vm3199_vm0, %v3195_v0 }
 0xa9f   :  { %2812 = vmatprep.subr.mxu1 %v3195_v0 }
 0xaa0   :  { %2813 = vmatpush3.msra.mxu1 %v3327_v54  ;;  %v2559_v54 = vmul.f32 -1.442695, %v1413_v43 }
 0xaa1   :  { %2814 = vmatprep.subr.mxu1 %v3195_v0 }
 0xaa2   :  { %2815 = vmatpush3.msra.mxu1 %v3333_v56  ;;  %3001 = vpow2.f32 %v2559_v54 }
 0xaa3   :  { %2816 = vmatprep.subr.mxu1 %v3195_v0 }
 0xaa4   :  { %2817 = vmatpush3.msra.mxu1 %v3343_v59 }
 0xaa5   :  { %2818 = vmatprep.subr.mxu1 %v3195_v0 }
 0xaa6   :  { %2819 = vmatpush3.msra.mxu1 %v3349_v60 }
 0xaa7   :  { %2820 = vmatprep.subr.mxu1 %v3195_v0 }
 0xaa8   :  { %2821 = vmatpush3.msra.mxu1 %v3355_v61 }
 0xaa9   :  { %2822 = vmatprep.subr.mxu1 %v3195_v0 }
 0xaaa   :  { %2823 = vmatpush3.msra.mxu1 %v3359_v62 }
 0xaab   :  { %2824 = vmatprep.subr.mxu1 %v3195_v0 }
 0xaac   :  { %2825 = vmatpush3.msra.mxu1 %v3369_v19 }
 0xaad   :  { %1638 = vmatprep.subr.mxu1 %v3253_v2 }
 0xaaf   :  { %v3002_v56 = vpop.eup %3001 }
 0xab0   :  { %v1417_v22 = vadd.f32 1.0, %v3002_v56  ;;  %v1621_v56 = vld [vmem:[#allocation2 + $0x5] ss:$8 sm:$0x3] }
 0xab2   :  { %3003 = vrcp.f32 %v1417_v22 }
 0xabf   :  { %v3004_v26 = vpop.eup %3003 }
 0xac0   :  { %v1426_v31 = vmul.f32 %v3004_v26, %v3576_v30  ;;  %v1435_v44 = vrot.slane %v3004_v26, 1 }
 0xad7   :  { %v1422_v23 = vpop.permute.xlu0 %1421 }
 0xad8   :  { %v1423_v24 = vrot.slane %v1422_v23, 1 }
 0xada   :  { %3005 = vtanh.f32 %v1423_v24 }
 0xae7   :  { %v3006_v27 = vpop.eup %3005 }
 0xae8   :  { %v1427_v29 = vmul.f32 %v3006_v27, %v3004_v26 }
 0xaea   :  { %1429 = vrot.lane.b32.xlu0 %v1427_v29, %s3198_s1 }
 0xb5c   :  { %v1430_v33 = vpop.permute.xlu0 %1429 }
 0xb5d   :  { %v3642_v34 = vadd.f32 %v1430_v33, %v1426_v31  ;;  %v1293_v2 = vpop.f32.mrf.mxu1  ;;  %v3722_v31 = vld [vmem:[#allocation6 + $0x30] sm:$0xff]  ;;  %v3726_v33 = vld [vmem:[#allocation6 + $0x28] sm:$0xff] }
 0xb5e   :  { %v1297_v35 = vadd.f32 %v1293_v2, %v1217_v32 }
 0xb5f   :  { %3007 = vtanh.f32 %v3642_v34  ;;  %v2809_v36 = vpop.f32.mrf.mxu1 }
 0xb60   :  { %3009 = vtanh.f32 %v1297_v35  ;;  %v2557_v40 = vmul.f32 -1.442695, %v1297_v35 }
 0xb62   :  { %3011 = vpow2.f32 %v2557_v40 }
 0xb6c   :  { %v3008_v37 = vpop.eup %3007 }
 0xb6d   :  { %v3010_v10 = vpop.eup %3009  ;;  %1438 = vrot.lane.b32.xlu0 %v3008_v37, %s3198_s1 }
 0xb6e   :  { %1307 = vrot.lane.b32.xlu1 %v3010_v10, %s3200_s23 }
 0xb6f   :  { %v3012_v41 = vpop.eup %3011 }
 0xb70   :  { %v1301_v42 = vadd.f32 1.0, %v3012_v41 }
 0xb72   :  { %3013 = vrcp.f32 %v1301_v42 }
 0xb7f   :  { %v3014_v30 = vpop.eup %3013 }
 0xb80   :  { %v1305_v13 = vmul.f32 %v3014_v30, %v3611_v5 }
 0xbdf   :  { %v1439_v45 = vpop.permute.xlu0 %1438 }
 0xbe0   :  { %v1441_v46 = vmul.f32 %v1439_v45, %v1435_v44  ;;  %v1308_v25 = vpop.permute.xlu1 %1307  ;;  %v3769_v45 = vld [vmem:[#allocation8 + $0x18] sm:$0xff] }
 0xbe1   :  { %v1310_v47 = vmul.f32 %v3014_v30, %v1308_v25  ;;  %v3783_v25 = vld [vmem:[#allocation8] sm:$0xff] }
 0xbe2   :  { %2827 = vmatmul.mubr.msk.f32.vlgmr.msra.gmra.mxu1 %vm134_vm1, %v1441_v46 }
 0xbe3   :  { %1639 = vmatpush1.msra.mxu1 %v3648_v48  ;;  %1312 = vrot.lane.b32.xlu1 %v1310_v47, %s3200_s23 }
 0xbe4   :  { %1640 = vmatprep.subr.mxu1 %v3652_v49  ;;  %1686 = vmatprep.mubr.f32.mxu1 %v3195_v0 }
 0xbe5   :  { %1641 = vmatpush1.msra.mxu1 %v3656_v50 }
 0xbe6   :  { %1642 = vmatprep.subr.mxu1 %v3659_v51 }
 0xbe7   :  { %1643 = vmatpush1.msra.mxu1 %v3662_v52 }
 0xbe8   :  { %1644 = vmatprep.subr.mxu1 %v3665_v39 }
 0xbe9   :  { %1645 = vmatpush1.msra.mxu1 %v3668_v63 }
 0xbea   :  { %1646 = vmatprep.subr.mxu1 %v3671_v3 }
 0xbeb   :  { %1647 = vmatpush1.msra.mxu1 %v3674_v4 }
 0xbec   :  { %1648 = vmatprep.subr.mxu1 %v3677_v6 }
 0xbed   :  { %1649 = vmatpush1.msra.mxu1 %v3680_v7 }
 0xbee   :  { %1650 = vmatprep.subr.mxu1 %v3683_v8 }
 0xbef   :  { %1651 = vmatpush1.msra.mxu1 %v3686_v9 }
 0xbf0   :  { %1652 = vmatprep.subr.mxu1 %v3689_v11 }
 0xbf1   :  { %1653 = vmatpush1.msra.mxu1 %v3692_v12 }
 0xbf2   :  { %2563 = vmatmul.mubr.msk.f32.vlgmr.msra.gmra.mxu1 %vm134_vm1, %v1441_v46  ;;  %2859 = vmatprep.subr.mxu1 %v3195_v0  ;;  %v3779_v46 = vld [vmem:[#allocation8 + $0x8] sm:$0xff] }
 0xbf3   :  { %2860 = vmatpush3.msra.mxu1 %v3330_v55  ;;  %2867 = vmatprep.mubr.msk.f32.mxu1 %vm3199_vm0, %v3195_v0 }
 0xbf4   :  { %2861 = vmatprep.subr.mxu1 %v3195_v0 }
 0xbf5   :  { %2862 = vmatpush3.msra.mxu1 %v3336_v57 }
 0xbf6   :  { %2863 = vmatprep.subr.mxu1 %v3195_v0 }
 0xbf7   :  { %2864 = vmatpush3.msra.mxu1 %v3340_v58 }
 0xbf8   :  { %2865 = vmatprep.subr.mxu1 %v3195_v0 }
 0xbf9   :  { %2866 = vmatpush3.msra.mxu1 %v3372_v20 }
 0xbfa   :  { %2870 = vmatprep.subr.mxu1 %v3195_v0 }
 0xc55   :  { %v1313_v55 = vpop.permute.xlu1 %1312 }
 0xc56   :  { %v3708_v14 = vadd.f32 %v1313_v55, %v1305_v13 }
 0xc58   :  { %3015 = vtanh.f32 %v3708_v14 }
 0xc65   :  { %v3016_v15 = vpop.eup %3015 }
 0xc66   :  { %1318 = vrot.lane.b32.xlu1 %v3016_v15, %s3200_s23 }
 0xca2   :  { %v1511_v57 = vpop.f32.mrf.mxu1 }
 0xca4   :  { %v2828_v16 = vpop.f32.mrf.mxu1 }
 0xcb2   :  { %v1688_v17 = vpop.f32.mrf.mxu1 }
 0xcb4   :  { %v1690_v58 = vpop.f32.mrf.mxu1 }
 0xcb5   :  { %v1695_v18 = vcombine.low %v1688_v17, %v1690_v58 }
 0xcb7   :  { %v1702_v43 = vrot.slane %v1695_v18, %v3316_v38 }
 0xcb9   :  { %v1709_v54 = vrot.slane %v1702_v43, %v3316_v38 }
 0xcbb   :  { %v1711_v22 = vadd.f32 %v1709_v54, %v1621_v56 }
 0xcbd   :  { %v2564_v23 = vmul.f32 -1.442695, %v1711_v22 }
 0xcbf   :  { %3017 = vpow2.f32 %v2564_v23 }
 0xccc   :  { %v3018_v24 = vpop.eup %3017 }
 0xccd   :  { %v1715_v27 = vadd.f32 1.0, %v3018_v24 }
 0xccf   :  { %3019 = vrcp.f32 %v1715_v27 }
 0xcd8   :  { %v1319_v20 = vpop.permute.xlu1 %1318 }
 0xcd9   :  { %v1321_v1 = vmul.f32 %v3014_v30, %v1319_v20  ;;  %v3775_v30 = vld [vmem:[#allocation8 + $0x10] sm:$0xff] }
 0xcdb   :  { %v1520_v5 = vrot.slane %v1321_v1, %v3306_v21 }
 0xcdd   :  { %1521 = vrot.lane.b32.xlu1 %v1520_v5, %s3198_s1 }
 0xce1   :  { %1719 = vrot.lane.b32.xlu1 %v1711_v22, %s3198_s1 }
 0xd4f   :  { %v1522_v26 = vpop.permute.xlu1 %1521 }
 0xd50   :  { %2838 = vmatmul.mubr.msk.f32.vlgmr.msra.gmra.mxu0 %vm330_vm2, %v1522_v26  ;;  %v1919_v26 = vld [vmem:[#allocation2 + $0x6] ss:$8 sm:$0x3] }
 0xd51   :  { %2841 = vmatpush3.msra.mxu0 %v3325_v53  ;;  %2856 = vmatprep.mubr.msk.f32.mxu0 %vm3199_vm0, %v3195_v0  ;;  %v3739_v53 = vld [vmem:[#allocation3 + $0x78] sm:$0xff] }
 0xd52   :  { %2842 = vmatprep.subr.mxu0 %v3195_v0 }
 0xd53   :  { %v1720_v29 = vpop.permute.xlu1 %1719  ;;  %2843 = vmatpush3.msra.mxu0 %v3722_v31 }
 0xd54   :  { %v1721_v32 = vrot.slane %v1720_v29, 1  ;;  %2844 = vmatprep.subr.mxu0 %v3195_v0 }
 0xd55   :  { %2845 = vmatpush3.msra.mxu0 %v3726_v33 }
 0xd56   :  { %3021 = vtanh.f32 %v1721_v32  ;;  %2846 = vmatprep.subr.mxu0 %v3195_v0 }
 0xd57   :  { %2847 = vmatpush3.msra.mxu0 %v3343_v59  ;;  %v3020_v59 = vpop.eup %3019 }
 0xd58   :  { %2848 = vmatprep.subr.mxu0 %v3195_v0  ;;  %v1733_v42 = vrot.slane %v3020_v59, 1 }
 0xd59   :  { %2849 = vmatpush3.msra.mxu0 %v3349_v60  ;;  %v1724_v60 = vmul.f32 %v3020_v59, %v3642_v34 }
 0xd5a   :  { %2850 = vmatprep.subr.mxu0 %v3195_v0 }
 0xd5b   :  { %2851 = vmatpush3.msra.mxu0 %v3355_v61 }
 0xd5c   :  { %2852 = vmatprep.subr.mxu0 %v3195_v0 }
 0xd5d   :  { %2853 = vmatpush3.msra.mxu0 %v3359_v62 }
 0xd5e   :  { %2854 = vmatprep.subr.mxu0 %v3195_v0 }
 0xd5f   :  { %2855 = vmatpush3.msra.mxu0 %v3369_v19  ;;  %v1515_v19 = vadd.f32 %v1511_v57, %v3434_v28 }
 0xd60   :  { %1936 = vmatprep.subr.mxu0 %v3739_v53 }
 0xd63   :  { %v3022_v2 = vpop.eup %3021 }
 0xd64   :  { %v1725_v35 = vmul.f32 %v3022_v2, %v3020_v59 }
 0xd66   :  { %1727 = vrot.lane.b32.xlu1 %v1725_v35, %s3198_s1  ;;  %v3799_v35 = vld [vmem:[#allocation6 + $0x38] sm:$0xff] }
 0xdd8   :  { %v1728_v61 = vpop.permute.xlu1 %1727 }
 0xdd9   :  { %v3744_v36 = vadd.f32 %v1728_v61, %v1724_v60 }
 0xddb   :  { %3023 = vtanh.f32 %v3744_v36 }
 0xde8   :  { %v3024_v62 = vpop.eup %3023 }
 0xde9   :  { %1736 = vrot.lane.b32.xlu1 %v3024_v62, %s3198_s1  ;;  %v3809_v62 = vld [vmem:[#allocation6 + $0x20] sm:$0xff] }
 0xe10   :  { %v1591_v37 = vpop.f32.mrf.mxu0 }
 0xe11   :  { %v1595_v10 = vadd.f32 %v1591_v37, %v1515_v19  ;;  %v3813_v19 = vld [vmem:[#allocation6 + $0x18] sm:$0xff]  ;;  %v3817_v37 = vld [vmem:[#allocation6 + $0x10] sm:$0xff] }
 0xe12   :  { %v2839_v40 = vpop.f32.mrf.mxu0 }
 0xe13   :  { %3025 = vtanh.f32 %v1595_v10  ;;  %v2562_v28 = vmul.f32 -1.442695, %v1595_v10  ;;  %v3821_v10 = vld [vmem:[#allocation6 + $0x8] sm:$0xff]  ;;  %v3825_v40 = vld [vmem:[#allocation6] sm:$0xff] }
 0xe15   :  { %3027 = vpow2.f32 %v2562_v28 }
 0xe20   :  { %v3026_v41 = vpop.eup %3025 }
 0xe21   :  { %1605 = vrot.lane.b32.xlu0 %v3026_v41, %s3200_s23 }
 0xe22   :  { %v3028_v47 = vpop.eup %3027 }
 0xe23   :  { %v1599_v13 = vadd.f32 1.0, %v3028_v47 }
 0xe25   :  { %3029 = vrcp.f32 %v1599_v13 }
 0xe32   :  { %v3030_v55 = vpop.eup %3029 }
 0xe33   :  { %v1603_v16 = vmul.f32 %v3030_v55, %v3708_v14 }
 0xe5b   :  { %v1737_v44 = vpop.permute.xlu1 %1736 }
 0xe5c   :  { %v1739_v34 = vmul.f32 %v1737_v44, %v1733_v42 }
 0xe5e   :  { %2857 = vmatmul.mubr.msk.f32.vlgmr.msra.gmra.mxu0 %vm134_vm1, %v1739_v34 }
 0xe5f   :  { %1937 = vmatpush1.msra.mxu0 %v3648_v48  ;;  %1984 = vmatprep.mubr.f32.mxu0 %v3195_v0 }
 0xe60   :  { %1938 = vmatprep.subr.mxu0 %v3652_v49 }
 0xe61   :  { %1939 = vmatpush1.msra.mxu0 %v3656_v50 }
 0xe62   :  { %1940 = vmatprep.subr.mxu0 %v3659_v51 }
 0xe63   :  { %1941 = vmatpush1.msra.mxu0 %v3662_v52 }
 0xe64   :  { %1942 = vmatprep.subr.mxu0 %v3665_v39 }
 0xe65   :  { %1943 = vmatpush1.msra.mxu0 %v3668_v63 }
 0xe66   :  { %1944 = vmatprep.subr.mxu0 %v3671_v3 }
 0xe67   :  { %1945 = vmatpush1.msra.mxu0 %v3674_v4 }
 0xe68   :  { %1946 = vmatprep.subr.mxu0 %v3677_v6 }
 0xe69   :  { %1947 = vmatpush1.msra.mxu0 %v3680_v7 }
 0xe6a   :  { %1948 = vmatprep.subr.mxu0 %v3683_v8 }
 0xe6b   :  { %1949 = vmatpush1.msra.mxu0 %v3686_v9 }
 0xe6c   :  { %1950 = vmatprep.subr.mxu0 %v3689_v11 }
 0xe6d   :  { %1951 = vmatpush1.msra.mxu0 %v3692_v12 }
 0xe6e   :  { %2568 = vmatmul.mubr.msk.f32.vlgmr.msra.gmra.mxu0 %vm134_vm1, %v1739_v34  ;;  %2889 = vmatprep.subr.mxu0 %v3195_v0 }
 0xe6f   :  { %2890 = vmatpush3.msra.mxu0 %v3769_v45  ;;  %2897 = vmatprep.mubr.msk.f32.mxu0 %vm3199_vm0, %v3195_v0 }
 0xe70   :  { %2891 = vmatprep.subr.mxu0 %v3195_v0 }
 0xe71   :  { %2892 = vmatpush3.msra.mxu0 %v3775_v30 }
 0xe72   :  { %2893 = vmatprep.subr.mxu0 %v3195_v0 }
 0xe73   :  { %2894 = vmatpush3.msra.mxu0 %v3779_v46 }
 0xe74   :  { %2895 = vmatprep.subr.mxu0 %v3195_v0 }
 0xe75   :  { %2896 = vmatpush3.msra.mxu0 %v3783_v25 }
 0xe76   :  { %2900 = vmatprep.subr.mxu0 %v3195_v0 }
 0xe93   :  { %v1606_v15 = vpop.permute.xlu0 %1605 }
 0xe94   :  { %v1608_v57 = vmul.f32 %v3030_v55, %v1606_v15 }
 0xe96   :  { %1610 = vrot.lane.b32.xlu0 %v1608_v57, %s3200_s23 }
 0xf08   :  { %v1611_v17 = vpop.permute.xlu0 %1610 }
 0xf09   :  { %v3789_v58 = vadd.f32 %v1611_v17, %v1603_v16 }
 0xf0b   :  { %3031 = vtanh.f32 %v3789_v58 }
 0xf18   :  { %v3032_v18 = vpop.eup %3031 }
 0xf19   :  { %1616 = vrot.lane.b32.xlu0 %v3032_v18, %s3200_s23 }
 0xf1e   :  { %v1809_v43 = vpop.f32.mrf.mxu0 }
 0xf20   :  { %v2858_v20 = vpop.f32.mrf.mxu0 }
 0xf2e   :  { %v1986_v1 = vpop.f32.mrf.mxu0 }
 0xf30   :  { %v1988_v54 = vpop.f32.mrf.mxu0 }
 0xf31   :  { %v1993_v5 = vcombine.low %v1986_v1, %v1988_v54 }
 0xf33   :  { %v2000_v56 = vrot.slane %v1993_v5, %v3316_v38 }
 0xf35   :  { %v2007_v24 = vrot.slane %v2000_v56, %v3316_v38 }
 0xf37   :  { %v2009_v27 = vadd.f32 %v2007_v24, %v1919_v26 }
 0xf39   :  { %v2569_v29 = vmul.f32 -1.442695, %v2009_v27 }
 0xf3b   :  { %3033 = vpow2.f32 %v2569_v29 }
 0xf48   :  { %v3034_v32 = vpop.eup %3033 }
 0xf49   :  { %v2013_v2 = vadd.f32 1.0, %v3034_v32 }
 0xf4b   :  { %3035 = vrcp.f32 %v2013_v2 }
 0xf58   :  { %v3036_v41 = vpop.eup %3035 }
 0xf59   :  { %v2022_v34 = vmul.f32 %v3036_v41, %v3744_v36  ;;  %v2031_v17 = vrot.slane %v3036_v41, 1 }
 0xf8b   :  { %v1617_v22 = vpop.permute.xlu0 %1616 }
 0xf8c   :  { %v1619_v23 = vmul.f32 %v3030_v55, %v1617_v22  ;;  %v3838_v55 = vld [vmem:[%s3926_s6] sm:$0x1]  ;;  %s3201_s6 = smov [#allocation9]  }
 0xf8d   :  { %s2530_s26 = sshll.u32 %s3201_s6, 4  ;;  %s2531_s26 = int_to_ptr.vmem [resolvable:$true] %s2530_s26 }
 0xf8e   :  { %v1818_v14 = vrot.slane %v1619_v23, %v3306_v21  ;;  %s3162_s27 = scalar_lea.vmem %s2531_s26, 16  ;;  %s3166_s28 = scalar_lea.vmem %s2531_s26, 32 }
 0xf8f   :  { %p3163_p1 = scmp.ne.s32.totalorder %s2531_s26, %s3162_s27  ;;  %p3167_p2 = scmp.lt.s32.totalorder %s2531_s26, %s2531_s26 }
 0xf90   :  { %1819 = vrot.lane.b32.xlu0 %v1818_v14, %s3198_s1  ;;  %p3168_p3 = scmp.lt.s32.totalorder %s3166_s28, %s3162_s27 }
 0xf92   :  { %p3169_p4 = por %p3168_p3, %p3167_p2 }
 0xf94   :  { %2017 = vrot.lane.b32.xlu0 %v2009_v27, %s3198_s1  ;;  %p3170_p5 = pnand %p3169_p4, %p3163_p1 }
0x1002   :  { %v1820_v59 = vpop.permute.xlu0 %1819 }
0x1003   :  { %2868 = vmatmul.mubr.msk.f32.vlgmr.msra.gmra.mxu1 %vm330_vm2, %v1820_v59 }
0x1004   :  { %2871 = vmatpush3.msra.mxu1 %v3799_v35  ;;  %2886 = vmatprep.mubr.msk.f32.mxu1 %vm3199_vm0, %v3195_v0 }
0x1005   :  { %2872 = vmatprep.subr.mxu1 %v3195_v0 }
0x1006   :  { %v2018_v60 = vpop.permute.xlu0 %2017  ;;  %2873 = vmatpush3.msra.mxu1 %v3722_v31 }
0x1007   :  { %v2019_v61 = vrot.slane %v2018_v60, 1  ;;  %2874 = vmatprep.subr.mxu1 %v3195_v0 }
0x1008   :  { %2875 = vmatpush3.msra.mxu1 %v3726_v33 }
0x1009   :  { %3037 = vtanh.f32 %v2019_v61  ;;  %2876 = vmatprep.subr.mxu1 %v3195_v0 }
0x100a   :  { %2877 = vmatpush3.msra.mxu1 %v3809_v62 }
0x100b   :  { %2878 = vmatprep.subr.mxu1 %v3195_v0 }
0x100c   :  { %2879 = vmatpush3.msra.mxu1 %v3813_v19 }
0x100d   :  { %2880 = vmatprep.subr.mxu1 %v3195_v0 }
0x100e   :  { %2881 = vmatpush3.msra.mxu1 %v3817_v37 }
0x100f   :  { %2882 = vmatprep.subr.mxu1 %v3195_v0 }
0x1010   :  { %2883 = vmatpush3.msra.mxu1 %v3821_v10 }
0x1011   :  { %2884 = vmatprep.subr.mxu1 %v3195_v0 }
0x1012   :  { %2885 = vmatpush3.msra.mxu1 %v3825_v40 }
0x1013   :  { %2234 = vmatprep.subr.mxu1 %v3739_v53  ;;  %v1813_v53 = vadd.f32 %v3838_v55, %v1809_v43  ;;  %v2217_v43 = vld [vmem:[#allocation2 + $0x7] ss:$8 sm:$0x3] }
0x1016   :  { %v3038_v42 = vpop.eup %3037 }
0x1017   :  { %v2023_v44 = vmul.f32 %v3038_v42, %v3036_v41 }
0x1019   :  { %2025 = vrot.lane.b32.xlu0 %v2023_v44, %s3198_s1 }
0x108b   :  { %v2026_v28 = vpop.permute.xlu0 %2025 }
0x108c   :  { %v3831_v47 = vadd.f32 %v2026_v28, %v2022_v34 }
0x108e   :  { %3039 = vtanh.f32 %v3831_v47 }
0x109b   :  { %v3040_v13 = vpop.eup %3039 }
0x109c   :  { %2034 = vrot.lane.b32.xlu0 %v3040_v13, %s3198_s1 }
0x10c3   :  { %v1889_v15 = vpop.f32.mrf.mxu1 }
0x10c4   :  { %v1893_v57 = vadd.f32 %v1889_v15, %v1813_v53 }
0x10c5   :  { %v2869_v16 = vpop.f32.mrf.mxu1 }
0x10c6   :  { %3041 = vtanh.f32 %v1893_v57 }
0x10d3   :  { %v3042_v36 = vpop.eup %3041 }
0x10d4   :  { %1903 = vrot.lane.b32.xlu1 %v3042_v36, %s3200_s23 }
0x110e   :  { %v2035_v18 = vpop.permute.xlu0 %2034 }
0x110f   :  { %v2037_v20 = vmul.f32 %v2035_v18, %v2031_v17 }
0x1111   :  { %2887 = vmatmul.mubr.msk.f32.vlgmr.msra.gmra.mxu1 %vm134_vm1, %v2037_v20 }
0x1112   :  { %2235 = vmatpush1.msra.mxu1 %v3648_v48  ;;  %2282 = vmatprep.mubr.f32.mxu1 %v3195_v0  ;;  %v2567_v48 = vmul.f32 -1.442695, %v1893_v57 }
0x1113   :  { %2236 = vmatprep.subr.mxu1 %v3652_v49 }
0x1114   :  { %2237 = vmatpush1.msra.mxu1 %v3656_v50  ;;  %3043 = vpow2.f32 %v2567_v48 }
0x1115   :  { %2238 = vmatprep.subr.mxu1 %v3659_v51 }
0x1116   :  { %2239 = vmatpush1.msra.mxu1 %v3662_v52 }
0x1117   :  { %2240 = vmatprep.subr.mxu1 %v3665_v39 }
0x1118   :  { %2241 = vmatpush1.msra.mxu1 %v3668_v63 }
0x1119   :  { %2242 = vmatprep.subr.mxu1 %v3671_v3 }
0x111a   :  { %2243 = vmatpush1.msra.mxu1 %v3674_v4 }
0x111b   :  { %2244 = vmatprep.subr.mxu1 %v3677_v6 }
0x111c   :  { %2245 = vmatpush1.msra.mxu1 %v3680_v7 }
0x111d   :  { %2246 = vmatprep.subr.mxu1 %v3683_v8 }
0x111e   :  { %2247 = vmatpush1.msra.mxu1 %v3686_v9 }
0x111f   :  { %2248 = vmatprep.subr.mxu1 %v3689_v11 }
0x1120   :  { %2249 = vmatpush1.msra.mxu1 %v3692_v12 }
0x1121   :  { %2573 = vmatmul.mubr.msk.f32.vlgmr.msra.gmra.mxu1 %vm134_vm1, %v2037_v20  ;;  %2919 = vmatprep.subr.mxu1 %v3195_v0  ;;  %v3044_v49 = vpop.eup %3043 }
0x1122   :  { %2920 = vmatpush3.msra.mxu1 %v3769_v45  ;;  %2927 = vmatprep.mubr.msk.f32.mxu1 %vm3199_vm0, %v3195_v0  ;;  %v1897_v50 = vadd.f32 1.0, %v3044_v49 }
0x1123   :  { %2921 = vmatprep.subr.mxu1 %v3195_v0 }
0x1124   :  { %2922 = vmatpush3.msra.mxu1 %v3775_v30  ;;  %3045 = vrcp.f32 %v1897_v50 }
0x1125   :  { %2923 = vmatprep.subr.mxu1 %v3195_v0 }
0x1126   :  { %2924 = vmatpush3.msra.mxu1 %v3779_v46 }
0x1127   :  { %2925 = vmatprep.subr.mxu1 %v3195_v0 }
0x1128   :  { %2926 = vmatpush3.msra.mxu1 %v3783_v25 }
0x1131   :  { %v3046_v51 = vpop.eup %3045 }
0x1132   :  { %v1901_v63 = vmul.f32 %v3046_v51, %v3789_v58 }
0x1146   :  { %v1904_v52 = vpop.permute.xlu1 %1903 }
0x1147   :  { %v1906_v39 = vmul.f32 %v3046_v51, %v1904_v52 }
0x1149   :  { %1908 = vrot.lane.b32.xlu1 %v1906_v39, %s3200_s23 }
0x11bb   :  { %v1909_v3 = vpop.permute.xlu1 %1908 }
0x11bc   :  { %v3872_v4 = vadd.f32 %v1909_v3, %v1901_v63 }
0x11be   :  { %3047 = vtanh.f32 %v3872_v4 }
0x11cb   :  { %v3048_v6 = vpop.eup %3047 }
0x11cc   :  { %1914 = vrot.lane.b32.xlu1 %v3048_v6, %s3200_s23 }
0x11d1   :  { %v2107_v7 = vpop.f32.mrf.mxu1 }
0x11d2   :  { %v2111_v32 = vadd.f32 %v3838_v55, %v2107_v7 }
0x11d3   :  { %v2888_v8 = vpop.f32.mrf.mxu1 }
0x11e1   :  { %v2284_v9 = vpop.f32.mrf.mxu1 }
0x11e3   :  { %v2286_v11 = vpop.f32.mrf.mxu1 }
0x11e4   :  { %v2291_v12 = vcombine.low %v2284_v9, %v2286_v11 }
0x11e6   :  { %v2298_v45 = vrot.slane %v2291_v12, %v3316_v38 }
0x11e8   :  { %v2305_v25 = vrot.slane %v2298_v45, %v3316_v38 }
0x11ea   :  { %v2307_v1 = vadd.f32 %v2305_v25, %v2217_v43 }
0x11ec   :  { %v2574_v54 = vmul.f32 -1.442695, %v2307_v1 }
0x11ee   :  { %3049 = vpow2.f32 %v2574_v54 }
0x11fb   :  { %v3050_v5 = vpop.eup %3049 }
0x11fc   :  { %v2311_v22 = vadd.f32 1.0, %v3050_v5 }
0x11fe   :  { %3051 = vrcp.f32 %v2311_v22 }
0x123e   :  { %v1915_v30 = vpop.permute.xlu1 %1914 }
0x123f   :  { %v1917_v46 = vmul.f32 %v3046_v51, %v1915_v30 }
0x1241   :  { %v2116_v58 = vrot.slane %v1917_v46, %v3306_v21 }
0x1243   :  { %2117 = vrot.lane.b32.xlu1 %v2116_v58, %s3198_s1 }
0x1247   :  { %2315 = vrot.lane.b32.xlu1 %v2307_v1, %s3198_s1 }
0x12b5   :  { %v2118_v56 = vpop.permute.xlu1 %2117 }
0x12b6   :  { %2898 = vmatmul.mubr.msk.f32.vlgmr.msra.gmra.mxu0 %vm330_vm2, %v2118_v56 }
0x12b7   :  { %2901 = vmatpush3.msra.mxu0 %v3799_v35  ;;  %2916 = vmatprep.mubr.msk.f32.mxu0 %vm3199_vm0, %v3195_v0 }
0x12b8   :  { %2902 = vmatprep.subr.mxu0 %v3195_v0 }
0x12b9   :  { %v2316_v38 = vpop.permute.xlu1 %2315  ;;  %2903 = vmatpush3.msra.mxu0 %v3722_v31  ;;  %v3052_v31 = vpop.eup %3051 }
0x12ba   :  { %v2317_v23 = vrot.slane %v2316_v38, 1  ;;  %2904 = vmatprep.subr.mxu0 %v3195_v0  ;;  %v2320_v14 = vmul.f32 %v3052_v31, %v3831_v47  ;;  %v2329_v60 = vrot.slane %v3052_v31, 1 }
0x12bb   :  { %2905 = vmatpush3.msra.mxu0 %v3726_v33 }
0x12bc   :  { %3053 = vtanh.f32 %v2317_v23  ;;  %2906 = vmatprep.subr.mxu0 %v3195_v0 }
0x12bd   :  { %2907 = vmatpush3.msra.mxu0 %v3809_v62 }
0x12be   :  { %2908 = vmatprep.subr.mxu0 %v3195_v0 }
0x12bf   :  { %2909 = vmatpush3.msra.mxu0 %v3813_v19 }
0x12c0   :  { %2910 = vmatprep.subr.mxu0 %v3195_v0 }
0x12c1   :  { %2911 = vmatpush3.msra.mxu0 %v3817_v37 }
0x12c2   :  { %2912 = vmatprep.subr.mxu0 %v3195_v0 }
0x12c3   :  { %2913 = vmatpush3.msra.mxu0 %v3821_v10 }
0x12c4   :  { %2914 = vmatprep.subr.mxu0 %v3195_v0 }
0x12c5   :  { %2915 = vmatpush3.msra.mxu0 %v3825_v40 }
0x12c9   :  { %v3054_v33 = vpop.eup %3053 }
0x12ca   :  { %v2321_v24 = vmul.f32 %v3054_v33, %v3052_v31 }
0x12cc   :  { %2323 = vrot.lane.b32.xlu1 %v2321_v24, %s3198_s1 }
0x133e   :  { %v2324_v26 = vpop.permute.xlu1 %2323 }
0x133f   :  { %v2326_v27 = vadd.f32 %v2324_v26, %v2320_v14 }
0x1341   :  { %3055 = vtanh.f32 %v2326_v27 }
0x134e   :  { %v3056_v29 = vpop.eup %3055 }
0x134f   :  { %2332 = vrot.lane.b32.xlu1 %v3056_v29, %s3198_s1 }
0x1376   :  { %v2187_v59 = vpop.f32.mrf.mxu0 }
0x1377   :  { %v2191_v2 = vadd.f32 %v2187_v59, %v2111_v32 }
0x1378   :  { %v2899_v0 = vpop.f32.mrf.mxu0 }
0x1379   :  { %3057 = vtanh.f32 %v2191_v2  ;;  %v2572_v19 = vmul.f32 -1.442695, %v2191_v2 }
0x137b   :  { %3059 = vpow2.f32 %v2572_v19 }
0x1386   :  { %v3058_v35 = vpop.eup %3057 }
0x1387   :  { %2201 = vrot.lane.b32.xlu0 %v3058_v35, %s3200_s23 }
0x1388   :  { %v3060_v37 = vpop.eup %3059 }
0x1389   :  { %v2195_v10 = vadd.f32 1.0, %v3060_v37 }
0x138b   :  { %3061 = vrcp.f32 %v2195_v10 }
0x1398   :  { %v3062_v40 = vpop.eup %3061 }
0x1399   :  { %v2199_v44 = vmul.f32 %v3062_v40, %v3872_v4 }
0x13c1   :  { %v2333_v61 = vpop.permute.xlu1 %2332 }
0x13c2   :  { %v2335_v62 = vmul.f32 %v2333_v61, %v2329_v60 }
0x13c4   :  { %2917 = vmatmul.mubr.msk.f32.vlgmr.msra.gmra.mxu0 %vm134_vm1, %v2335_v62 }
0x13f9   :  { %v2202_v41 = vpop.permute.xlu0 %2201 }
0x13fa   :  { %v2204_v42 = vmul.f32 %v3062_v40, %v2202_v41 }
0x13fc   :  { %2206 = vrot.lane.b32.xlu0 %v2204_v42, %s3200_s23 }
0x146e   :  { %v2207_v34 = vpop.permute.xlu0 %2206 }
0x146f   :  { %v2209_v28 = vadd.f32 %v2207_v34, %v2199_v44 }
0x1471   :  { %3063 = vtanh.f32 %v2209_v28 }
0x147e   :  { %v3064_v47 = vpop.eup %3063 }
0x147f   :  { %2212 = vrot.lane.b32.xlu0 %v3064_v47, %s3200_s23 }
0x1484   :  { %v2405_v13 = vpop.f32.mrf.mxu0 }
0x1485   :  { %v2409_v17 = vadd.f32 %v3838_v55, %v2405_v13 }
0x1486   :  { %v2918_v53 = vpop.f32.mrf.mxu0 }
0x14f1   :  { %v2213_v15 = vpop.permute.xlu0 %2212 }
0x14f2   :  { %v2215_v57 = vmul.f32 %v3062_v40, %v2213_v15 }
0x14f4   :  { %v2414_v16 = vrot.slane %v2215_v57, %v3306_v21 }
0x14f6   :  { %2415 = vrot.lane.b32.xlu0 %v2414_v16, %s3198_s1 }
0x1568   :  { %v2416_v36 = vpop.permute.xlu0 %2415 }
0x1569   :  { %2928 = vmatmul.mubr.msk.f32.vlgmr.msra.gmra.mxu1 %vm330_vm2, %v2416_v36 }
0x1629   :  { %v2485_v18 = vpop.f32.mrf.mxu1 }
0x162a   :  { %v2489_v20 = vadd.f32 %v2485_v18, %v2409_v17 }
0x162b   :  { %v2929_v48 = vpop.f32.mrf.mxu1 }
0x162c   :  { %3065 = vtanh.f32 %v2489_v20  ;;  %v2577_v50 = vmul.f32 -1.442695, %v2489_v20 }
0x162e   :  { %3067 = vpow2.f32 %v2577_v50 }
0x1639   :  { %v3066_v49 = vpop.eup %3065 }
0x163a   :  { %2499 = vrot.lane.b32.xlu1 %v3066_v49, %s3200_s23 }
0x163b   :  { %v3068_v51 = vpop.eup %3067 }
0x163c   :  { %v2493_v52 = vadd.f32 1.0, %v3068_v51 }
0x163e   :  { %3069 = vrcp.f32 %v2493_v52 }
0x164b   :  { %v3070_v39 = vpop.eup %3069 }
0x164c   :  { %v2497_v4 = vmul.f32 %v3070_v39, %v2209_v28 }
0x16ac   :  { %v2500_v63 = vpop.permute.xlu1 %2499 }
0x16ad   :  { %v2502_v3 = vmul.f32 %v3070_v39, %v2500_v63 }
0x16af   :  { %2504 = vrot.lane.b32.xlu0 %v2502_v3, %s3200_s23 }
0x1721   :  { %v2505_v6 = vpop.permute.xlu0 %2504 }
0x1722   :  { %v2507_v55 = vadd.f32 %v2505_v6, %v2497_v4 }
0x1724   :  { %3071 = vtanh.f32 %v2507_v55 }
0x1731   :  { %v3072_v7 = vpop.eup %3071 }
0x1732   :  { %2510 = vrot.lane.b32.xlu1 %v3072_v7, %s3200_s23 }
0x17a4   :  { %v2511_v8 = vpop.permute.xlu1 %2510 }
0x17a5   :  { %v2513_v9 = vmul.f32 %v3070_v39, %v2511_v8 }
0x17a7   :  { %v2518_v11 = vrot.slane %v2513_v9, %v3306_v21 }
0x17a9   :  { %2519 = vrot.lane.b32.xlu0 %v2518_v11, %s3198_s1 }
0x181b   :  { %v2520_v12 = vpop.permute.xlu0 %2519 }
0x181c   :  { %2523 = vst.msk [vmem:[#allocation9] sm:$0x1] %vm2522_vm3, %v2520_v12 }
0x181d   :  { %3173 = shalt.err (!%p3170_p5)
}
0x181e   :  { %2533 = dma.vmem_to_hbm [thread:$0]  %s2531_s26, 16, %s3927_s7, [#allocation5]  }
0x181f   :  { %3186 = dma.done.wait [#allocation5], 16  }
0x1820   :  { %3187 = vsyncadd [#allocation5], 4294967280 }
0x1821   :  { %2537 = vsyncpa [#allocation4], 1 }
0x1822   :  { %2538 = vsyncpa [#allocation7], 1 }
0x1823   :  { %2539 = vsyncpa [#allocation5], 1 }

</bundles_post_ra>
